<compile_context>
chip_gen: v5e
topology: v5e:2x2
jax: 0.10.0
libtpu: 0.0.40
codegen_flags: <defaults>
</compile_context>

<pallas_src>
import jax
import jax.numpy as jnp
from jax.experimental import pallas as pl
from jax.experimental.pallas import tpu as pltpu

# Physics-domain bounds (the PyTorch module references these as globals).
X_MIN, X_MAX = 0.0, 1.0
Y_MIN, Y_MAX = 0.0, 1.0

LAYERS = [2, 80, 80, 80, 80, 80, 3]


def pinn_kernel(x_ref,
                w0_ref, b0_ref,
                w1_ref, b1_ref,
                w2_ref, b2_ref,
                w3_ref, b3_ref,
                w4_ref, b4_ref,
                w5_ref, b5_ref,
                out_ref):
    """Feature-major MLP. x_ref: (2, tile_m); out_ref: (3, tile_m); weights (out, in)."""
    # ---- layer 0 (input normalization pre-folded into w0/b0; no residual) ----
    u = jnp.tanh(
        jnp.dot(w0_ref[...], x_ref[...], preferred_element_type=jnp.float32)
        + b0_ref[...])

    # ---- layers 1..3: residual (80 == 80, 0 < i < len(layers)-2) ----
    for w_ref, b_ref in ((w1_ref, b1_ref), (w2_ref, b2_ref), (w3_ref, b3_ref)):
        u = jnp.tanh(
            jnp.dot(w_ref[...], u, preferred_element_type=jnp.float32)
            + b_ref[...]) + u

    # ---- layer 4: last hidden layer, no residual ----
    u = jnp.tanh(
        jnp.dot(w4_ref[...], u, preferred_element_type=jnp.float32)
        + b4_ref[...])

    # ---- output linear layer (no activation); (3, tile_m) lane-dense store ----
    out_ref[...] = (
        jnp.dot(w5_ref[...], u, preferred_element_type=jnp.float32)
        + b5_ref[...]).astype(out_ref.dtype)


def _fold_normalization(params):
    """Fold u = 2*(x - lo)/range - 1 into the first layer: W0' = W0*scale, b0' = b0 + W0@shift."""
    w0, b0 = params[0]
    scale = jnp.array([2.0 / (X_MAX - X_MIN), 2.0 / (Y_MAX - Y_MIN)], jnp.float32)
    shift = jnp.array([-(2.0 * X_MIN / (X_MAX - X_MIN) + 1.0),
                       -(2.0 * Y_MIN / (Y_MAX - Y_MIN) + 1.0)], jnp.float32)
    w0f = w0 * scale[None, :]            # scale each input column of (out, in)
    b0f = b0 + w0 @ shift[:, None]       # (out, 1)
    return [(w0f, b0f)] + list(params[1:])


def corrected_pinn_forward(x, params, *, tile_m=512):
    """x: (N, 2) float32. params: list of (W (out,in), b (out,1)) pairs (PyTorch layout)."""
    n, d_in = x.shape
    assert d_in == LAYERS[0]
    d_out = LAYERS[-1]

    params = _fold_normalization(params)

    # Pad the batch to a multiple of tile_m (no divisibility requirement on N) and go
    # feature-major: (features, batch) so the batch dim is lane-dense.
    n_pad = ((n + tile_m - 1) // tile_m) * tile_m
    x_t = jnp.transpose(x)                      # (2, N)
    if n_pad != n:
        x_t = jnp.pad(x_t, ((0, 0), (0, n_pad - n)))

    grid = (n_pad // tile_m,)

    # x / out tiled along the (lane) batch axis; weights & biases are small and passed
    # as full-array blocks resident in VMEM across grid steps (constant index_map).
    in_specs = [pl.BlockSpec((d_in, tile_m), lambda i: (0, i))]
    flat_params = []
    for w, b in params:
        in_specs.append(pl.BlockSpec(w.shape, lambda i: (0, 0)))
        in_specs.append(pl.BlockSpec(b.shape, lambda i: (0, 0)))
        flat_params.extend([w, b])
    out_spec = pl.BlockSpec((d_out, tile_m), lambda i: (0, i))

    param_bytes = int(sum(int(w.size) + int(b.size) for w, b in params)) * 4
    flops = 2 * n_pad * sum(LAYERS[i] * LAYERS[i + 1] for i in range(len(LAYERS) - 1))
    cost = pl.CostEstimate(
        flops=int(flops),
        transcendentals=int(n_pad * sum(LAYERS[1:-1])),
        bytes_accessed=int(n_pad * (d_in + d_out) * 4 + param_bytes),
    )

    out_t = pl.pallas_call(
        pinn_kernel,
        out_shape=jax.ShapeDtypeStruct((d_out, n_pad), jnp.float32),
        grid=grid,
        in_specs=in_specs,
        out_specs=out_spec,
        compiler_params=pltpu.CompilerParams(
            dimension_semantics=("parallel",),
            vmem_limit_bytes=32 * 1024 * 1024,
        ),
        cost_estimate=cost,
    )(x_t, *flat_params)

    return jnp.transpose(out_t)[:n]             # (N, 3)


def init_params(key):
    """Xavier-normal weights (out, in), zero biases (out, 1) — matches the PyTorch __init__."""
    params = []
    for i in range(len(LAYERS) - 1):
        fan_in, fan_out = LAYERS[i], LAYERS[i + 1]
        key, sub = jax.random.split(key)
        std = (2.0 / (fan_in + fan_out)) ** 0.5
        w = std * jax.random.normal(sub, (fan_out, fan_in), dtype=jnp.float32)
        b = jnp.zeros((fan_out, 1), dtype=jnp.float32)
        params.append((w, b))
    return params


def reference_forward(x, params):
    """Pure-JAX reference mirroring the PyTorch forward (explicit normalization)."""
    lo = jnp.array([X_MIN, Y_MIN], dtype=jnp.float32)
    rng = jnp.array([X_MAX - X_MIN, Y_MAX - Y_MIN], dtype=jnp.float32)
    u = 2.0 * (x - lo) / rng - 1.0
    hp = jax.lax.Precision.HIGHEST
    n_layers = len(params)
    for i, (w, b) in enumerate(params[:-1]):
        u_new = jnp.tanh(jnp.dot(u, w.T, precision=hp) + b[:, 0])
        if 0 < i < n_layers - 2 and u.shape[-1] == u_new.shape[-1]:
            u = u_new + u
        else:
            u = u_new
    w, b = params[-1]
    return jnp.dot(u, w.T, precision=hp) + b[:, 0]


if __name__ == "__main__":
    key = jax.random.PRNGKey(0)
    pkey, xkey = jax.random.split(key)

    params = init_params(pkey)

    # Collocation points: (N, 2) = (x, y) coordinates in the physical domain.
    # N deliberately not a multiple of tile_m to exercise the padding path;
    # padded grid = 1024/512 = 2 steps (even, so both v7x TensorCores get work).
    N = 1000
    x = jax.random.uniform(xkey, (N, 2), dtype=jnp.float32,
                           minval=X_MIN, maxval=X_MAX)

    out = jax.block_until_ready(corrected_pinn_forward(x, params, tile_m=512))

    ref = reference_forward(x, params)
    assert out.shape == (N, 3), out.shape
    max_err = float(jnp.max(jnp.abs(out - ref)))
    assert jnp.allclose(out, ref, atol=5e-4, rtol=5e-4), max_err

    print("KERNEL_OK")
</pallas_src>

<mosaic_0001>
module attributes {stable_mosaic.version = 11 : i64} {
  func.func @pinn_kernel(%arg0: i32, %arg1: memref<2x512xf32, #tpu.memory_space<vmem>>, %arg2: memref<80x2xf32, #tpu.memory_space<vmem>>, %arg3: memref<80x1xf32, #tpu.memory_space<vmem>>, %arg4: memref<80x80xf32, #tpu.memory_space<vmem>>, %arg5: memref<80x1xf32, #tpu.memory_space<vmem>>, %arg6: memref<80x80xf32, #tpu.memory_space<vmem>>, %arg7: memref<80x1xf32, #tpu.memory_space<vmem>>, %arg8: memref<80x80xf32, #tpu.memory_space<vmem>>, %arg9: memref<80x1xf32, #tpu.memory_space<vmem>>, %arg10: memref<80x80xf32, #tpu.memory_space<vmem>>, %arg11: memref<80x1xf32, #tpu.memory_space<vmem>>, %arg12: memref<3x80xf32, #tpu.memory_space<vmem>>, %arg13: memref<3x1xf32, #tpu.memory_space<vmem>>, %arg14: memref<3x512xf32, #tpu.memory_space<vmem>>) attributes {dimension_semantics = [#tpu.dimension_semantics<parallel>], iteration_bounds = array<i64: 2>, scalar_prefetch = 0 : i64, scratch_operands = 0 : i64, tpu.core_type = #tpu.core_type<tc>, window_params = [{transform_indices = @transform_0, window_bounds = array<i64: 2, 512>}, {pipeline_mode = #tpu.pipeline_mode<synchronous>, transform_indices = @transform_1, window_bounds = array<i64: 80, 2>}, {pipeline_mode = #tpu.pipeline_mode<synchronous>, transform_indices = @transform_2, window_bounds = array<i64: 80, 1>}, {pipeline_mode = #tpu.pipeline_mode<synchronous>, transform_indices = @transform_3, window_bounds = array<i64: 80, 80>}, {pipeline_mode = #tpu.pipeline_mode<synchronous>, transform_indices = @transform_4, window_bounds = array<i64: 80, 1>}, {pipeline_mode = #tpu.pipeline_mode<synchronous>, transform_indices = @transform_5, window_bounds = array<i64: 80, 80>}, {pipeline_mode = #tpu.pipeline_mode<synchronous>, transform_indices = @transform_6, window_bounds = array<i64: 80, 1>}, {pipeline_mode = #tpu.pipeline_mode<synchronous>, transform_indices = @transform_7, window_bounds = array<i64: 80, 80>}, {pipeline_mode = #tpu.pipeline_mode<synchronous>, transform_indices = @transform_8, window_bounds = array<i64: 80, 1>}, {pipeline_mode = #tpu.pipeline_mode<synchronous>, transform_indices = @transform_9, window_bounds = array<i64: 80, 80>}, {pipeline_mode = #tpu.pipeline_mode<synchronous>, transform_indices = @transform_10, window_bounds = array<i64: 80, 1>}, {pipeline_mode = #tpu.pipeline_mode<synchronous>, transform_indices = @transform_11, window_bounds = array<i64: 3, 80>}, {pipeline_mode = #tpu.pipeline_mode<synchronous>, transform_indices = @transform_12, window_bounds = array<i64: 3, 1>}, {transform_indices = @transform_13, window_bounds = array<i64: 3, 512>}]} {
    %c0 = arith.constant 0 : index
    %c0_0 = arith.constant 0 : index
    %0 = vector.load %arg2[%c0, %c0_0] : memref<80x2xf32, #tpu.memory_space<vmem>>, vector<80x2xf32>
    %c0_1 = arith.constant 0 : index
    %c0_2 = arith.constant 0 : index
    %1 = vector.load %arg1[%c0_1, %c0_2] : memref<2x512xf32, #tpu.memory_space<vmem>>, vector<2x512xf32>
    %cst = arith.constant dense<0.000000e+00> : vector<80x512xf32>
    %2 = tpu.matmul %0, %1, %cst {dimension_numbers = #tpu.dot_dimension_numbers<[1], [0], [0], [1], [0, 0, 1, 1], [], []>} : vector<80x2xf32>, vector<2x512xf32>, vector<80x512xf32> -> vector<80x512xf32>
    %c0_3 = arith.constant 0 : index
    %c0_4 = arith.constant 0 : index
    %3 = vector.load %arg3[%c0_3, %c0_4] : memref<80x1xf32, #tpu.memory_space<vmem>>, vector<80x1xf32>
    %4 = vector.broadcast %3 : vector<80x1xf32> to vector<80x512xf32>
    %5 = arith.addf %2, %4 : vector<80x512xf32>
    %6 = math.tanh %5 : vector<80x512xf32>
    %c0_5 = arith.constant 0 : index
    %c0_6 = arith.constant 0 : index
    %7 = vector.load %arg4[%c0_5, %c0_6] : memref<80x80xf32, #tpu.memory_space<vmem>>, vector<80x80xf32>
    %cst_7 = arith.constant dense<0.000000e+00> : vector<80x512xf32>
    %8 = tpu.matmul %7, %6, %cst_7 {dimension_numbers = #tpu.dot_dimension_numbers<[1], [0], [0], [1], [0, 0, 1, 1], [], []>} : vector<80x80xf32>, vector<80x512xf32>, vector<80x512xf32> -> vector<80x512xf32>
    %c0_8 = arith.constant 0 : index
    %c0_9 = arith.constant 0 : index
    %9 = vector.load %arg5[%c0_8, %c0_9] : memref<80x1xf32, #tpu.memory_space<vmem>>, vector<80x1xf32>
    %10 = vector.broadcast %9 : vector<80x1xf32> to vector<80x512xf32>
    %11 = arith.addf %8, %10 : vector<80x512xf32>
    %12 = math.tanh %11 : vector<80x512xf32>
    %13 = arith.addf %12, %6 : vector<80x512xf32>
    %c0_10 = arith.constant 0 : index
    %c0_11 = arith.constant 0 : index
    %14 = vector.load %arg6[%c0_10, %c0_11] : memref<80x80xf32, #tpu.memory_space<vmem>>, vector<80x80xf32>
    %cst_12 = arith.constant dense<0.000000e+00> : vector<80x512xf32>
    %15 = tpu.matmul %14, %13, %cst_12 {dimension_numbers = #tpu.dot_dimension_numbers<[1], [0], [0], [1], [0, 0, 1, 1], [], []>} : vector<80x80xf32>, vector<80x512xf32>, vector<80x512xf32> -> vector<80x512xf32>
    %c0_13 = arith.constant 0 : index
    %c0_14 = arith.constant 0 : index
    %16 = vector.load %arg7[%c0_13, %c0_14] : memref<80x1xf32, #tpu.memory_space<vmem>>, vector<80x1xf32>
    %17 = vector.broadcast %16 : vector<80x1xf32> to vector<80x512xf32>
    %18 = arith.addf %15, %17 : vector<80x512xf32>
    %19 = math.tanh %18 : vector<80x512xf32>
    %20 = arith.addf %19, %13 : vector<80x512xf32>
    %c0_15 = arith.constant 0 : index
    %c0_16 = arith.constant 0 : index
    %21 = vector.load %arg8[%c0_15, %c0_16] : memref<80x80xf32, #tpu.memory_space<vmem>>, vector<80x80xf32>
    %cst_17 = arith.constant dense<0.000000e+00> : vector<80x512xf32>
    %22 = tpu.matmul %21, %20, %cst_17 {dimension_numbers = #tpu.dot_dimension_numbers<[1], [0], [0], [1], [0, 0, 1, 1], [], []>} : vector<80x80xf32>, vector<80x512xf32>, vector<80x512xf32> -> vector<80x512xf32>
    %c0_18 = arith.constant 0 : index
    %c0_19 = arith.constant 0 : index
    %23 = vector.load %arg9[%c0_18, %c0_19] : memref<80x1xf32, #tpu.memory_space<vmem>>, vector<80x1xf32>
    %24 = vector.broadcast %23 : vector<80x1xf32> to vector<80x512xf32>
    %25 = arith.addf %22, %24 : vector<80x512xf32>
    %26 = math.tanh %25 : vector<80x512xf32>
    %27 = arith.addf %26, %20 : vector<80x512xf32>
    %c0_20 = arith.constant 0 : index
    %c0_21 = arith.constant 0 : index
    %28 = vector.load %arg10[%c0_20, %c0_21] : memref<80x80xf32, #tpu.memory_space<vmem>>, vector<80x80xf32>
    %cst_22 = arith.constant dense<0.000000e+00> : vector<80x512xf32>
    %29 = tpu.matmul %28, %27, %cst_22 {dimension_numbers = #tpu.dot_dimension_numbers<[1], [0], [0], [1], [0, 0, 1, 1], [], []>} : vector<80x80xf32>, vector<80x512xf32>, vector<80x512xf32> -> vector<80x512xf32>
    %c0_23 = arith.constant 0 : index
    %c0_24 = arith.constant 0 : index
    %30 = vector.load %arg11[%c0_23, %c0_24] : memref<80x1xf32, #tpu.memory_space<vmem>>, vector<80x1xf32>
    %31 = vector.broadcast %30 : vector<80x1xf32> to vector<80x512xf32>
    %32 = arith.addf %29, %31 : vector<80x512xf32>
    %33 = math.tanh %32 : vector<80x512xf32>
    %c0_25 = arith.constant 0 : index
    %c0_26 = arith.constant 0 : index
    %34 = vector.load %arg12[%c0_25, %c0_26] : memref<3x80xf32, #tpu.memory_space<vmem>>, vector<3x80xf32>
    %cst_27 = arith.constant dense<0.000000e+00> : vector<3x512xf32>
    %35 = tpu.matmul %34, %33, %cst_27 {dimension_numbers = #tpu.dot_dimension_numbers<[1], [0], [0], [1], [0, 0, 1, 1], [], []>} : vector<3x80xf32>, vector<80x512xf32>, vector<3x512xf32> -> vector<3x512xf32>
    %c0_28 = arith.constant 0 : index
    %c0_29 = arith.constant 0 : index
    %36 = vector.load %arg13[%c0_28, %c0_29] : memref<3x1xf32, #tpu.memory_space<vmem>>, vector<3x1xf32>
    %37 = vector.broadcast %36 : vector<3x1xf32> to vector<3x512xf32>
    %38 = arith.addf %35, %37 : vector<3x512xf32>
    %c0_30 = arith.constant 0 : index
    %c0_31 = arith.constant 0 : index
    %39 = vector.load %arg14[%c0_30, %c0_31] : memref<3x512xf32, #tpu.memory_space<vmem>>, vector<3x512xf32>
    tpu.vector_store %arg14[%c0_30, %c0_31], %38 {strides = array<i32>} : memref<3x512xf32, #tpu.memory_space<vmem>>, vector<3x512xf32>,
    return
  }
  func.func @transform_0(%arg0: i32) -> (i32, i32) {
    %c0_i32 = arith.constant 0 : i32
    %c0_i32_0 = arith.constant 0 : i32
    return %c0_i32, %arg0 : i32, i32
  }
  func.func @transform_1(%arg0: i32) -> (i32, i32) {
    %c0_i32 = arith.constant 0 : i32
    %c0_i32_0 = arith.constant 0 : i32
    %c0_i32_1 = arith.constant 0 : i32
    return %c0_i32, %c0_i32_0 : i32, i32
  }
  func.func @transform_2(%arg0: i32) -> (i32, i32) {
    %c0_i32 = arith.constant 0 : i32
    %c0_i32_0 = arith.constant 0 : i32
    %c0_i32_1 = arith.constant 0 : i32
    return %c0_i32, %c0_i32_0 : i32, i32
  }
  func.func @transform_3(%arg0: i32) -> (i32, i32) {
    %c0_i32 = arith.constant 0 : i32
    %c0_i32_0 = arith.constant 0 : i32
    %c0_i32_1 = arith.constant 0 : i32
    return %c0_i32, %c0_i32_0 : i32, i32
  }
  func.func @transform_4(%arg0: i32) -> (i32, i32) {
    %c0_i32 = arith.constant 0 : i32
    %c0_i32_0 = arith.constant 0 : i32
    %c0_i32_1 = arith.constant 0 : i32
    return %c0_i32, %c0_i32_0 : i32, i32
  }
  func.func @transform_5(%arg0: i32) -> (i32, i32) {
    %c0_i32 = arith.constant 0 : i32
    %c0_i32_0 = arith.constant 0 : i32
    %c0_i32_1 = arith.constant 0 : i32
    return %c0_i32, %c0_i32_0 : i32, i32
  }
  func.func @transform_6(%arg0: i32) -> (i32, i32) {
    %c0_i32 = arith.constant 0 : i32
    %c0_i32_0 = arith.constant 0 : i32
    %c0_i32_1 = arith.constant 0 : i32
    return %c0_i32, %c0_i32_0 : i32, i32
  }
  func.func @transform_7(%arg0: i32) -> (i32, i32) {
    %c0_i32 = arith.constant 0 : i32
    %c0_i32_0 = arith.constant 0 : i32
    %c0_i32_1 = arith.constant 0 : i32
    return %c0_i32, %c0_i32_0 : i32, i32
  }
  func.func @transform_8(%arg0: i32) -> (i32, i32) {
    %c0_i32 = arith.constant 0 : i32
    %c0_i32_0 = arith.constant 0 : i32
    %c0_i32_1 = arith.constant 0 : i32
    return %c0_i32, %c0_i32_0 : i32, i32
  }
  func.func @transform_9(%arg0: i32) -> (i32, i32) {
    %c0_i32 = arith.constant 0 : i32
    %c0_i32_0 = arith.constant 0 : i32
    %c0_i32_1 = arith.constant 0 : i32
    return %c0_i32, %c0_i32_0 : i32, i32
  }
  func.func @transform_10(%arg0: i32) -> (i32, i32) {
    %c0_i32 = arith.constant 0 : i32
    %c0_i32_0 = arith.constant 0 : i32
    %c0_i32_1 = arith.constant 0 : i32
    return %c0_i32, %c0_i32_0 : i32, i32
  }
  func.func @transform_11(%arg0: i32) -> (i32, i32) {
    %c0_i32 = arith.constant 0 : i32
    %c0_i32_0 = arith.constant 0 : i32
    %c0_i32_1 = arith.constant 0 : i32
    return %c0_i32, %c0_i32_0 : i32, i32
  }
  func.func @transform_12(%arg0: i32) -> (i32, i32) {
    %c0_i32 = arith.constant 0 : i32
    %c0_i32_0 = arith.constant 0 : i32
    %c0_i32_1 = arith.constant 0 : i32
    return %c0_i32, %c0_i32_0 : i32, i32
  }
  func.func @transform_13(%arg0: i32) -> (i32, i32) {
    %c0_i32 = arith.constant 0 : i32
    %c0_i32_0 = arith.constant 0 : i32
    return %c0_i32, %arg0 : i32, i32
  }
}

</mosaic_0001>

<bundles_post_ra>
// kernel: tpu_custom_call.1
= control target key start
LH: loop header
LB: loop body
LE: loop exit
PB: predicated region body
PF: predicated region fallthrough
CT: control target
= control target key end

     0   :  { %18 = vsyncpa [#allocation3], 0  ;;  %s4928_s0 = inlined_call_operand.vmem [shape: f32[2,1024], index: 0, kind: input, shape index: {}]   ;;  %s4929_s1 = inlined_call_operand.vmem [shape: f32[80,2], index: 1, kind: input, shape index: {}]   ;;  %s4930_s2 = inlined_call_operand.vmem [shape: f32[80,1], index: 2, kind: input, shape index: {}]   ;;  %s4931_s3 = inlined_call_operand.vmem [shape: f32[80,80], index: 3, kind: input, shape index: {}]   ;;  %s4932_s4 = inlined_call_operand.vmem [shape: f32[80,1], index: 4, kind: input, shape index: {}]   ;;  %s4933_s5 = inlined_call_operand.vmem [shape: f32[80,80], index: 5, kind: input, shape index: {}]   ;;  %s4934_s6 = inlined_call_operand.vmem [shape: f32[80,1], index: 6, kind: input, shape index: {}]   ;;  %s4935_s7 = inlined_call_operand.vmem [shape: f32[80,80], index: 7, kind: input, shape index: {}]   ;;  %s4936_s8 = inlined_call_operand.vmem [shape: f32[80,1], index: 8, kind: input, shape index: {}]   ;;  %s4937_s9 = inlined_call_operand.vmem [shape: f32[80,80], index: 9, kind: input, shape index: {}]   ;;  %s4938_s10 = inlined_call_operand.vmem [shape: f32[80,1], index: 10, kind: input, shape index: {}]   ;;  %s4939_s11 = inlined_call_operand.vmem [shape: f32[3,80], index: 11, kind: input, shape index: {}]   ;;  %s4940_s12 = inlined_call_operand.vmem [shape: f32[3,1], index: 12, kind: input, shape index: {}]   ;;  %s4941_s13 = inlined_call_operand.hbm [shape: f32[3,1024], index: 13, kind: output, shape index: {}]  }
   0x1   :  { %20 = vsyncpa [#allocation3 + $0x1], 0  ;;  %s3198_s25 = smov 0   ;;  %s3200_s26 = smov 0  }
   0x2   :  { %s3202_s27 = smov 0   ;;  %s3204_s28 = smov 0  }
   0x3 LB: > { %5008 = sst [smem:[#allocation5_spill]] %s3121_s27  ;;  %s3219_s29 = sadd.s32 4294967295, %s3125_s28   ;;  %s3125_s28 = sphi %s3204_s28, %s5169_s28   ;;  %s3121_s27 = sphi %s3202_s27, %s5171_s27   ;;  %s3117_s26 = sphi %s3200_s26, %s5173_s26   ;;  %s3113_s25 = sphi %s3198_s25, %s5172_s25  }
   0x4   : > { %s2399_s30 = sadd.s32 4294967294, %s3125_s28   ;;  %s3223_s14 = sadd.s32 1, %s3125_s28  }
   0x5   : > { %5009 = sst [smem:[#allocation6_spill]] %s3223_s14  ;;  %s311_s15 = sadd.s32 1, %s3121_s27 }
   0x6   : > { %s308_s16 = ssub.s32 %s3125_s28, %s3223_s14  ;;  %p321_p0 = scmp.ne.s32.totalorder %s3121_s27, %s3117_s26 }
   0x7   : > { %p309_p1 = scmp.eq.s32.totalorder %s308_s16, 0  ;;  %p322_p2 = scmp.eq.s32.totalorder %s3219_s29, 1 }
   0x8   : > { %p327_p3 = scmp.ne.s32.totalorder %s3117_s26, %s3113_s25  ;;  %p328_p4 = scmp.eq.s32.totalorder %s2399_s30, 1 }
   0x9   : > { %s3234_s17 = scalar_select %p309_p1, %s3121_s27, %s311_s15  }
   0xa   : > { %p3236_p5 = por %p322_p2, %p321_p0  ;;  %p3240_p6 = por %p328_p4, %p327_p3 }
   0xb   : > { %5010 = sst [smem:[#allocation7_spill]] %s3234_s17  ;;  %p2402_p7 = scmp.ge.s32.totalorder %s3125_s28, 1 }
   0xc   : > { %p391_p8 = scmp.lt.s32.totalorder %s3125_s28, 3 }
   0xe   : > { %p392_p9 = pnand %p2402_p7, %p391_p8 }
  0x10   : > { %395 = sbr.rel (%p392_p9) target bundleno = 1350 (0x546), region = 72 }
  0x15   : > { %v462_v0 = vld [vmem:[%s4930_s2 + $0x48] sm:$0xff]  ;;  %v460_v1 = vld [vmem:[%s4930_s2 + $0x38] sm:$0xff]  ;;  %s2404_s15 = sshll.u32 %s3219_s29, 2  ;;  %v3127_v3 = vmov 0   ;;  %v459_v4 = vld [vmem:[%s4930_s2 + $0x30] sm:$0xff]  ;;  %vm550_vm0 = vcmask 1041408  }
  0x16   : > { %v458_v2 = vld [vmem:[%s4930_s2 + $0x28] sm:$0xff]  ;;  %2662 = vset.pattern.permute.xlu2 %v3127_v3  ;;  %2661 = vset.pattern.permute.xlu1 %v3127_v3  ;;  %p436_p10 = scmp.lt.s32.totalorder %s2404_s15, 7  ;;  %v461_v6 = vld [vmem:[%s4930_s2 + $0x40] sm:$0xff]  ;;  %vm519_vm1 = vcmask 15360   ;;  %v456_v13 = vld [vmem:[%s4930_s2 + $0x18] sm:$0xff]  ;;  %vm857_vm2 = vcmask 654336  }
  0x17   : > { %2660 = vset.pattern.permute.xlu0 %v3127_v3  ;;  %500 = vperm.xlu1 %2661, %v460_v1   ;;  %v457_v7 = vld [vmem:[%s4930_s2 + $0x20] sm:$0xff]  ;;  %v455_v14 = vld [vmem:[%s4930_s2 + $0x10] sm:$0xff]  ;;  %v454_v15 = vld [vmem:[%s4930_s2 + $0x8] sm:$0xff]  ;;  %s432_s20 = sand.u32 1, %s3117_s26   ;;  %vm2316_vm3 = vcmask 1043456   ;;  %s2619_s23 = sshll.u32 %s3219_s29, 4 }
  0x18   : > { %510 = vperm.xlu0 %2660, %v462_v0   ;;  %490 = vperm.xlu2 %2662, %v458_v2   ;;  %s5175_s15 = smov (!%p436_p10, %s2404_s15), 7  ;;  %v442_v8 = vld [vmem:[%s4929_s1] sm:$0xff]  ;;  %v443_v16 = vld [vmem:[%s4929_s1 + $0x8] sm:$0xff]  ;;  %v444_v20 = vld [vmem:[%s4929_s1 + $0x10] sm:$0xff]  ;;  %s2403_s21 = sshll.u32 %s432_s20, 4 }
  0x19   : > { %s2405_s16 = sshll.u32 %s5175_s15, 1  ;;  %v806_v17 = vld [vmem:[%s4932_s4 + $0x48] sm:$0xff]  ;;  %v453_v18 = vld [vmem:[%s4930_s2] sm:$0xff]  ;;  %v803_v21 = vld [vmem:[%s4932_s4 + $0x30] sm:$0xff]  ;;  %s2335_s15 = scalar_lea.hbm %s4941_s13, %s2619_s23 }
  0x1a   : > { %s439_s22 = scalar_lea.vmem %s4928_s0, %s2405_s16  ;;  %v805_v19 = vld [vmem:[%s4932_s4 + $0x40] sm:$0xff]  ;;  %v804_v22 = vld [vmem:[%s4932_s4 + $0x38] sm:$0xff]  ;;  %v802_v23 = vld [vmem:[%s4932_s4 + $0x28] sm:$0xff]  ;;  %s2339_s27 = sshll.u32 %s2335_s15, 4  ;;  %s2340_s27 = int_to_ptr.hbm [resolvable:$true] %s2339_s27 }
  0x1b   : > { %v452_v5 = vld [vmem:[%s439_s22] sm:$0xff]  ;;  %v445_v24 = vld [vmem:[%s4929_s1 + $0x18] sm:$0xff]  ;;  %v799_v27 = vld [vmem:[%s4932_s4 + $0x10] sm:$0xff]  ;;  %s434_s22 = scalar_lea.vmem [#allocation2], %s2403_s21  ;;  %s2324_s14 = scalar_lea.sflag [#allocation3], %s432_s20 }
  0x1c   : > { %514 = vst [vmem:[#allocation1] ss:$4 sm:$0xff] %v452_v5  ;;  %v800_v25 = vld [vmem:[%s4932_s4 + $0x18] sm:$0xff]  ;;  %v801_v26 = vld [vmem:[%s4932_s4 + $0x20] sm:$0xff]  ;;  %v798_v30 = vld [vmem:[%s4932_s4 + $0x8] sm:$0xff]  ;;  %s2337_s16 = sshll.u32 %s434_s22, 4  ;;  %s2338_s16 = int_to_ptr.vmem [resolvable:$true] %s2337_s16 }
  0x1d   : > { %v446_v28 = vld [vmem:[%s4929_s1 + $0x20] sm:$0xff]  ;;  %v1175_v31 = vld [vmem:[%s4934_s6 + $0x48] sm:$0xff]  ;;  %v1173_v33 = vld [vmem:[%s4934_s6 + $0x38] sm:$0xff]  ;;  %s3077_s17 = sshra.s32 %s2340_s27, 4  ;;  %s3083_s24 = scalar_lea.hbm %s4941_s13, 32  ;;  %s3078_s17 = int_to_ptr.hbm [resolvable:$true] %s3077_s17 }
  0x1e   : > { %v797_v29 = vld [vmem:[%s4932_s4] sm:$0xff]  ;;  %v447_v32 = vld [vmem:[%s4929_s1 + $0x28] sm:$0xff]  ;;  %v1172_v35 = vld [vmem:[%s4934_s6 + $0x30] sm:$0xff]  ;;  %s3079_s29 = scalar_lea.hbm %s3078_s17, 16  ;;  %p3084_p0 = scmp.lt.s32.totalorder %s3078_s17, %s4941_s13 }
  0x1f   : > { %495 = vperm.xlu1 %2661, %v459_v4   ;;  %v1174_v34 = vld [vmem:[%s4934_s6 + $0x40] sm:$0xff]  ;;  %v448_v36 = vld [vmem:[%s4929_s1 + $0x30] sm:$0xff]  ;;  %v1171_v38 = vld [vmem:[%s4934_s6 + $0x28] sm:$0xff]  ;;  %p3080_p11 = scmp.ne.s32.totalorder %s3078_s17, %s3079_s29  ;;  %p3085_p1 = scmp.lt.s32.totalorder %s3083_s24, %s3079_s29 }
  0x20   : > { %505 = vperm.xlu0 %2660, %v461_v6   ;;  %485 = vperm.xlu2 %2662, %v457_v7   ;;  %v1170_v37 = vld [vmem:[%s4934_s6 + $0x20] sm:$0xff]  ;;  %v1169_v39 = vld [vmem:[%s4934_s6 + $0x18] sm:$0xff]  ;;  %v1167_v41 = vld [vmem:[%s4934_s6 + $0x8] sm:$0xff] }
  0x21   : > { %v449_v40 = vld [vmem:[%s4929_s1 + $0x38] sm:$0xff]  ;;  %v1168_v42 = vld [vmem:[%s4934_s6 + $0x10] sm:$0xff]  ;;  %v1166_v43 = vld [vmem:[%s4934_s6] sm:$0xff]  ;;  %p3081_p12 = pnand %p3080_p11, %p3236_p5  ;;  %p3086_p2 = por %p3085_p1, %p3084_p0 }
  0x22   : > { %v450_v44 = vld [vmem:[%s4929_s1 + $0x40] sm:$0xff]  ;;  %v1543_v46 = vld [vmem:[%s4936_s8 + $0x48] sm:$0xff]  ;;  %v1541_v47 = vld [vmem:[%s4936_s8 + $0x38] sm:$0xff] }
  0x23   : > { %v515_v9 = vld.sshfl [vmem:[#allocation1] sm:$0xff pattern:$0x73625140]  ;;  %v516_v10 = vld.sshfl [vmem:[#allocation1 + $0x8] sm:$0xff pattern:$0x73625140]  ;;  %p3082_p13 = pneg %p3081_p12 }
  0x24   : > { %2406 = vmatpush.msk.msra.mxu0 %vm550_vm0, %v515_v9  ;;  %2417 = vmatpush.msk.msra.mxu1 %vm550_vm0, %v516_v10  ;;  %v517_v11 = vld.sshfl [vmem:[#allocation1 + $0x10] sm:$0xff pattern:$0x73625140]  ;;  %v518_v12 = vld.sshfl [vmem:[#allocation1 + $0x18] sm:$0xff pattern:$0x73625140] }
  0x25   : > { %2428 = vmatpush.msk.msra.mxu2 %vm550_vm0, %v517_v11  ;;  %2439 = vmatpush.msk.msra.mxu3 %vm550_vm0, %v518_v12  ;;  %v1542_v45 = vld [vmem:[%s4936_s8 + $0x40] sm:$0xff]  ;;  %v451_v48 = vld [vmem:[%s4929_s1 + $0x48] sm:$0xff]  ;;  %v1540_v50 = vld [vmem:[%s4936_s8 + $0x30] sm:$0xff]  ;;  %p3087_p3 = pnand %p3086_p2, %p3082_p13 }
  0x26   : > { %2407 = vmatmul.msk.f32.vlgmr.msra.gmra.mxu0 %vm519_vm1, %v442_v8  ;;  %2418 = vmatmul.msk.f32.vlgmr.msra.gmra.mxu1 %vm519_vm1, %v442_v8  ;;  %v1539_v49 = vld [vmem:[%s4936_s8 + $0x28] sm:$0xff]  ;;  %v1538_v51 = vld [vmem:[%s4936_s8 + $0x20] sm:$0xff]  ;;  %v1536_v52 = vld [vmem:[%s4936_s8 + $0x10] sm:$0xff] }
  0x27   : > { %2429 = vmatmul.msk.f32.vlgmr.msra.gmra.mxu2 %vm519_vm1, %v442_v8  ;;  %2440 = vmatmul.msk.f32.vlgmr.msra.gmra.mxu3 %vm519_vm1, %v442_v8  ;;  %v1537_v53 = vld [vmem:[%s4936_s8 + $0x18] sm:$0xff]  ;;  %v1535_v54 = vld [vmem:[%s4936_s8 + $0x8] sm:$0xff]  ;;  %v1534_v56 = vld [vmem:[%s4936_s8] sm:$0xff] }
  0x28   : > { %480 = vperm.xlu0 %2660, %v456_v13   ;;  %475 = vperm.xlu1 %2661, %v455_v14   ;;  %v1911_v55 = vld [vmem:[%s4938_s10 + $0x48] sm:$0xff]  ;;  %v1910_v57 = vld [vmem:[%s4938_s10 + $0x40] sm:$0xff]  ;;  %v1908_v58 = vld [vmem:[%s4938_s10 + $0x30] sm:$0xff] }
  0x29   : > { %470 = vperm.xlu2 %2662, %v454_v15   ;;  %v1909_v59 = vld [vmem:[%s4938_s10 + $0x38] sm:$0xff]  ;;  %v1907_v60 = vld [vmem:[%s4938_s10 + $0x28] sm:$0xff]  ;;  %v1906_v62 = vld [vmem:[%s4938_s10 + $0x20] sm:$0xff] }
  0x2a   : > { %v1905_v61 = vld [vmem:[%s4938_s10 + $0x18] sm:$0xff]  ;;  %v1904_v63 = vld [vmem:[%s4938_s10 + $0x10] sm:$0xff]  ;;  %v1902_v0 = vld [vmem:[%s4938_s10] sm:$0xff] }
  0x2b   : > { %v1903_v1 = vld [vmem:[%s4938_s10 + $0x8] sm:$0xff]  ;;  %v2221_v2 = vld [vmem:[%s4940_s12] sm:$0x7] }
  0x2e   : > { %2408 = vmatmul.msk.f32.gmra.mxu0 %vm519_vm1, %v443_v16  ;;  %2419 = vmatmul.msk.f32.gmra.mxu1 %vm519_vm1, %v443_v16 }
  0x2f   : > { %2430 = vmatmul.msk.f32.gmra.mxu2 %vm519_vm1, %v443_v16  ;;  %2441 = vmatmul.msk.f32.gmra.mxu3 %vm519_vm1, %v443_v16 }
  0x30   : > { %854 = vperm.xlu1 %2661, %v806_v17   ;;  %465 = vperm.xlu0 %2660, %v453_v18  }
  0x31   : > { %849 = vperm.xlu2 %2662, %v805_v19  }
  0x36   : > { %2409 = vmatmul.msk.f32.gmra.mxu0 %vm519_vm1, %v444_v20  ;;  %2420 = vmatmul.msk.f32.gmra.mxu1 %vm519_vm1, %v444_v20 }
  0x37   : > { %2431 = vmatmul.msk.f32.gmra.mxu2 %vm519_vm1, %v444_v20  ;;  %2442 = vmatmul.msk.f32.gmra.mxu3 %vm519_vm1, %v444_v20 }
  0x38   : > { %839 = vperm.xlu1 %2661, %v803_v21   ;;  %844 = vperm.xlu0 %2660, %v804_v22  }
  0x39   : > { %834 = vperm.xlu2 %2662, %v802_v23  }
  0x3e   : > { %2410 = vmatmul.msk.f32.gmra.mxu0 %vm519_vm1, %v445_v24  ;;  %2421 = vmatmul.msk.f32.gmra.mxu1 %vm519_vm1, %v445_v24 }
  0x3f   : > { %2432 = vmatmul.msk.f32.gmra.mxu2 %vm519_vm1, %v445_v24  ;;  %2443 = vmatmul.msk.f32.gmra.mxu3 %vm519_vm1, %v445_v24 }
  0x40   : > { %824 = vperm.xlu1 %2661, %v800_v25   ;;  %829 = vperm.xlu0 %2660, %v801_v26  }
  0x41   : > { %819 = vperm.xlu2 %2662, %v799_v27  }
  0x46   : > { %2411 = vmatmul.msk.f32.gmra.mxu0 %vm519_vm1, %v446_v28  ;;  %2422 = vmatmul.msk.f32.gmra.mxu1 %vm519_vm1, %v446_v28 }
  0x47   : > { %2433 = vmatmul.msk.f32.gmra.mxu2 %vm519_vm1, %v446_v28  ;;  %2444 = vmatmul.msk.f32.gmra.mxu3 %vm519_vm1, %v446_v28 }
  0x48   : > { %809 = vperm.xlu1 %2661, %v797_v29   ;;  %814 = vperm.xlu0 %2660, %v798_v30  }
  0x49   : > { %1223 = vperm.xlu2 %2662, %v1175_v31  }
  0x4e   : > { %2412 = vmatmul.msk.f32.gmra.mxu0 %vm519_vm1, %v447_v32  ;;  %2423 = vmatmul.msk.f32.gmra.mxu1 %vm519_vm1, %v447_v32 }
  0x4f   : > { %2434 = vmatmul.msk.f32.gmra.mxu2 %vm519_vm1, %v447_v32  ;;  %2445 = vmatmul.msk.f32.gmra.mxu3 %vm519_vm1, %v447_v32 }
  0x50   : > { %1213 = vperm.xlu1 %2661, %v1173_v33   ;;  %1218 = vperm.xlu0 %2660, %v1174_v34  }
  0x51   : > { %1208 = vperm.xlu2 %2662, %v1172_v35  }
  0x56   : > { %2413 = vmatmul.msk.f32.gmra.mxu0 %vm519_vm1, %v448_v36  ;;  %2424 = vmatmul.msk.f32.gmra.mxu1 %vm519_vm1, %v448_v36 }
  0x57   : > { %2435 = vmatmul.msk.f32.gmra.mxu2 %vm519_vm1, %v448_v36  ;;  %2446 = vmatmul.msk.f32.gmra.mxu3 %vm519_vm1, %v448_v36 }
  0x58   : > { %1198 = vperm.xlu1 %2661, %v1170_v37   ;;  %1203 = vperm.xlu0 %2660, %v1171_v38  }
  0x59   : > { %1193 = vperm.xlu2 %2662, %v1169_v39  }
  0x5e   : > { %2414 = vmatmul.msk.f32.gmra.mxu0 %vm519_vm1, %v449_v40  ;;  %2425 = vmatmul.msk.f32.gmra.mxu1 %vm519_vm1, %v449_v40 }
  0x5f   : > { %2436 = vmatmul.msk.f32.gmra.mxu2 %vm519_vm1, %v449_v40  ;;  %2447 = vmatmul.msk.f32.gmra.mxu3 %vm519_vm1, %v449_v40 }
  0x60   : > { %1183 = vperm.xlu1 %2661, %v1167_v41   ;;  %1188 = vperm.xlu0 %2660, %v1168_v42  }
  0x61   : > { %1178 = vperm.xlu2 %2662, %v1166_v43  }
  0x66   : > { %2415 = vmatmul.msk.f32.gmra.mxu0 %vm519_vm1, %v450_v44  ;;  %2426 = vmatmul.msk.f32.gmra.mxu1 %vm519_vm1, %v450_v44 }
  0x67   : > { %2437 = vmatmul.msk.f32.gmra.mxu2 %vm519_vm1, %v450_v44  ;;  %2448 = vmatmul.msk.f32.gmra.mxu3 %vm519_vm1, %v450_v44 }
  0x68   : > { %1586 = vperm.xlu1 %2661, %v1542_v45   ;;  %1591 = vperm.xlu0 %2660, %v1543_v46  }
  0x69   : > { %1581 = vperm.xlu2 %2662, %v1541_v47  }
  0x6e   : > { %2416 = vmatmul.msk.f32.gmra.mxu0 %vm519_vm1, %v451_v48  ;;  %2427 = vmatmul.msk.f32.gmra.mxu1 %vm519_vm1, %v451_v48 }
  0x6f   : > { %2438 = vmatmul.msk.f32.gmra.mxu2 %vm519_vm1, %v451_v48  ;;  %2449 = vmatmul.msk.f32.gmra.mxu3 %vm519_vm1, %v451_v48 }
  0x70   : > { %1571 = vperm.xlu1 %2661, %v1539_v49   ;;  %1576 = vperm.xlu0 %2660, %v1540_v50  }
  0x71   : > { %1566 = vperm.xlu2 %2662, %v1538_v51  }
  0x72   : > { %v3493_v23 = vpop.permute.xlu2 %490 }
  0x78   : > { %1556 = vperm.xlu1 %2661, %v1536_v52   ;;  %1561 = vperm.xlu0 %2660, %v1537_v53  }
  0x79   : > { %1551 = vperm.xlu2 %2662, %v1535_v54  }
  0x7a   : > { %v3507_v33 = vpop.permute.xlu2 %485 }
  0x80   : > { %1959 = vperm.xlu1 %2661, %v1911_v55   ;;  %1546 = vperm.xlu0 %2660, %v1534_v56  }
  0x81   : > { %1954 = vperm.xlu2 %2662, %v1910_v57  }
  0x83   : > { %v3518_v42 = vpop.permute.xlu2 %470 }
  0x88   : > { %1944 = vperm.xlu1 %2661, %v1908_v58   ;;  %1949 = vperm.xlu0 %2660, %v1909_v59  }
  0x89   : > { %1939 = vperm.xlu2 %2662, %v1907_v60   ;;  %v3499_v27 = vpop.permute.xlu1 %500 }
  0x8a   : > { %v3485_v17 = vpop.permute.xlu0 %510 }
  0x90   : > { %1929 = vperm.xlu1 %2661, %v1905_v61   ;;  %1934 = vperm.xlu0 %2660, %v1906_v62  }
  0x91   : > { %1924 = vperm.xlu2 %2662, %v1904_v63   ;;  %v3509_v35 = vpop.permute.xlu1 %495 }
  0x92   : > { %v3491_v22 = vpop.permute.xlu0 %505 }
  0x98   : > { %1914 = vperm.xlu1 %2661, %v1902_v0   ;;  %1919 = vperm.xlu0 %2660, %v1903_v1  }
  0x99   : > { %2224 = vperm.xlu2 %2662, %v2221_v2  }
  0x9a   : > { %v3501_v29 = vpop.permute.xlu0 %480  ;;  %v3522_v45 = vpop.permute.xlu1 %475 }
  0xa2   : > { %v3515_v39 = vpop.permute.xlu0 %465 }
  0xa3   : > { %v576_v3 = vpop.f32.mrf.mxu0  ;;  %v623_v4 = vpop.f32.mrf.mxu1 }
  0xa4   : > { %v577_v41 = vadd.f32 %v576_v3, %v3515_v39  ;;  %v624_v43 = vadd.f32 %v623_v4, %v3515_v39 }
  0xa6   : > { %2663 = vtanh.f32 %v577_v41 }
  0xa7   : > { %2665 = vtanh.f32 %v624_v43 }
  0xaa   : > { %v3473_v5 = vpop.f32.mrf.mxu2  ;;  %v3475_v6 = vpop.f32.mrf.mxu3 }
  0xab   : > { %v579_v7 = vpop.f32.mrf.mxu0  ;;  %v626_v8 = vpop.f32.mrf.mxu1 }
  0xac   : > { %v580_v44 = vadd.f32 %v579_v7, %v3518_v42  ;;  %v627_v46 = vadd.f32 %v626_v8, %v3518_v42  ;;  %v3531_v57 = vpop.eup %2663 }
  0xad   : > { %5013 = vst [vmem:[#allocation8_spill] sm:$0xff] %v3531_v57  ;;  %v3534_v59 = vpop.eup %2665 }
  0xae   : > { %2667 = vtanh.f32 %v580_v44  ;;  %5014 = vst [vmem:[#allocation9_spill] sm:$0xff] %v3534_v59 }
  0xaf   : > { %2669 = vtanh.f32 %v627_v46 }
  0xb2   : > { %v3477_v9 = vpop.f32.mrf.mxu2  ;;  %v3479_v10 = vpop.f32.mrf.mxu3 }
  0xb3   : > { %v582_v11 = vpop.f32.mrf.mxu0  ;;  %v629_v12 = vpop.f32.mrf.mxu1 }
  0xb4   : > { %v583_v47 = vadd.f32 %v582_v11, %v3522_v45  ;;  %v630_v48 = vadd.f32 %v629_v12, %v3522_v45  ;;  %v3537_v61 = vpop.eup %2667 }
  0xb5   : > { %5015 = vst [vmem:[#allocation10_spill] sm:$0xff] %v3537_v61  ;;  %v3540_v63 = vpop.eup %2669 }
  0xb6   : > { %2671 = vtanh.f32 %v583_v47  ;;  %5016 = vst [vmem:[#allocation11_spill] sm:$0xff] %v3540_v63 }
  0xb7   : > { %2673 = vtanh.f32 %v630_v48 }
  0xba   : > { %v3481_v13 = vpop.f32.mrf.mxu2  ;;  %v3483_v14 = vpop.f32.mrf.mxu3 }
  0xbb   : > { %v585_v15 = vpop.f32.mrf.mxu0  ;;  %v632_v16 = vpop.f32.mrf.mxu1 }
  0xbc   : > { %v586_v50 = vadd.f32 %v585_v15, %v3501_v29  ;;  %v633_v53 = vadd.f32 %v632_v16, %v3501_v29  ;;  %v3543_v2 = vpop.eup %2671 }
  0xbd   : > { %v3545_v7 = vpop.eup %2673 }
  0xbe   : > { %2675 = vtanh.f32 %v586_v50  ;;  %5017 = vst [vmem:[#allocation12_spill] sm:$0xff] %v3545_v7 }
  0xbf   : > { %2677 = vtanh.f32 %v633_v53 }
  0xc2   : > { %v3487_v18 = vpop.f32.mrf.mxu2  ;;  %v3489_v19 = vpop.f32.mrf.mxu3 }
  0xc3   : > { %v588_v20 = vpop.f32.mrf.mxu0  ;;  %v635_v21 = vpop.f32.mrf.mxu1 }
  0xc4   : > { %v589_v55 = vadd.f32 %v588_v20, %v3507_v33  ;;  %v636_v56 = vadd.f32 %v635_v21, %v3507_v33  ;;  %v3548_v12 = vpop.eup %2675 }
  0xc5   : > { %v3552_v20 = vpop.eup %2677 }
  0xc6   : > { %2679 = vtanh.f32 %v589_v55 }
  0xc7   : > { %2681 = vtanh.f32 %v636_v56 }
  0xca   : > { %v3495_v24 = vpop.f32.mrf.mxu2  ;;  %v3497_v25 = vpop.f32.mrf.mxu3 }
  0xcb   : > { %v591_v26 = vpop.f32.mrf.mxu0  ;;  %v638_v28 = vpop.f32.mrf.mxu1 }
  0xcc   : > { %v592_v58 = vadd.f32 %v591_v26, %v3493_v23  ;;  %v639_v60 = vadd.f32 %v638_v28, %v3493_v23  ;;  %v3555_v26 = vpop.eup %2679 }
  0xce   : > { %2683 = vtanh.f32 %v592_v58 }
  0xcf   : > { %2685 = vtanh.f32 %v639_v60 }
  0xd2   : > { %v3503_v30 = vpop.f32.mrf.mxu2  ;;  %v3505_v31 = vpop.f32.mrf.mxu3 }
  0xd3   : > { %v594_v32 = vpop.f32.mrf.mxu0  ;;  %v641_v34 = vpop.f32.mrf.mxu1 }
  0xd4   : > { %v595_v28 = vadd.f32 %v594_v32, %v3509_v35 }
  0xda   : > { %v3511_v36 = vpop.f32.mrf.mxu2  ;;  %v3513_v37 = vpop.f32.mrf.mxu3 }
  0xdb   : > { %v597_v38 = vpop.f32.mrf.mxu0  ;;  %v644_v40 = vpop.f32.mrf.mxu1  ;;  %v689_v60 = vadd.f32 %v3511_v36, %v3509_v35 }
  0xdc   : > { %v598_v62 = vadd.f32 %v597_v38, %v3499_v27  ;;  %v645_v0 = vadd.f32 %v644_v40, %v3499_v27  ;;  %v3558_v38 = vpop.eup %2681  ;;  %v642_v40 = vadd.f32 %v641_v34, %v3509_v35 }
  0xdd   : > { %v3561_v41 = vpop.eup %2683 }
  0xde   : > { %2687 = vtanh.f32 %v598_v62  ;;  %v3563_v43 = vpop.eup %2685  ;;  %v730_v62 = vadd.f32 %v3497_v25, %v3507_v33  ;;  %v727_v25 = vadd.f32 %v3489_v19, %v3501_v29  ;;  %v724_v19 = vadd.f32 %v3483_v14, %v3522_v45 }
  0xdf   : > { %2689 = vtanh.f32 %v645_v0  ;;  %v721_v14 = vadd.f32 %v3479_v10, %v3518_v42  ;;  %v718_v10 = vadd.f32 %v3475_v6, %v3515_v39 }
  0xe2   : > { %v691_v49 = vpop.f32.mrf.mxu2  ;;  %v738_v51 = vpop.f32.mrf.mxu3 }
  0xe3   : > { %v600_v52 = vpop.f32.mrf.mxu0  ;;  %v647_v54 = vpop.f32.mrf.mxu1  ;;  %v739_v56 = vadd.f32 %v738_v51, %v3499_v27  ;;  %v733_v51 = vadd.f32 %v3505_v31, %v3493_v23  ;;  %v680_v31 = vadd.f32 %v3487_v18, %v3501_v29  ;;  %v677_v18 = vadd.f32 %v3481_v13, %v3522_v45 }
  0xe4   : > { %v601_v15 = vadd.f32 %v600_v52, %v3491_v22  ;;  %v648_v21 = vadd.f32 %v647_v54, %v3491_v22  ;;  %v3565_v46 = vpop.eup %2687  ;;  %v692_v54 = vadd.f32 %v691_v49, %v3499_v27  ;;  %v686_v49 = vadd.f32 %v3503_v30, %v3493_v23 }
  0xe5   : > { %v3569_v50 = vpop.eup %2689  ;;  %v674_v13 = vadd.f32 %v3477_v9, %v3518_v42  ;;  %v671_v9 = vadd.f32 %v3473_v5, %v3515_v39  ;;  %v787_v39 = vld [vmem:[%s4931_s3] sm:$0xff] }
  0xea   : > { %v694_v1 = vpop.f32.mrf.mxu2  ;;  %v741_v3 = vpop.f32.mrf.mxu3 }
  0xeb   : > { %v603_v4 = vpop.f32.mrf.mxu0  ;;  %v650_v11 = vpop.f32.mrf.mxu1  ;;  %v695_v47 = vadd.f32 %v694_v1, %v3491_v22  ;;  %v742_v34 = vadd.f32 %v741_v3, %v3491_v22  ;;  %v736_v22 = vadd.f32 %v3513_v37, %v3509_v35  ;;  %v683_v37 = vadd.f32 %v3495_v24, %v3507_v33 }
  0xec   : > { %v604_v8 = vadd.f32 %v603_v4, %v3485_v17  ;;  %v651_v16 = vadd.f32 %v650_v11, %v3485_v17 }
  0xee   : > { %2691 = vtanh.f32 %v604_v8 }
  0xef   : > { %2693 = vtanh.f32 %v651_v16 }
  0xf0   : > { %2695 = vtanh.f32 %v601_v15 }
  0xf1   : > { %2697 = vtanh.f32 %v648_v21 }
  0xf2   : > { %v697_v44 = vpop.f32.mrf.mxu2  ;;  %2699 = vtanh.f32 %v595_v28  ;;  %v744_v48 = vpop.f32.mrf.mxu3 }
  0xf3   : > { %v698_v32 = vadd.f32 %v697_v44, %v3485_v17  ;;  %2701 = vtanh.f32 %v642_v40  ;;  %v745_v52 = vadd.f32 %v744_v48, %v3485_v17  ;;  %v788_v40 = vld [vmem:[%s4931_s3 + $0x8] sm:$0xff]  ;;  %v789_v44 = vld [vmem:[%s4931_s3 + $0x10] sm:$0xff] }
  0xf4   : > { %v3573_v53 = vpop.eup %2691  ;;  %v792_v48 = vld [vmem:[%s4931_s3 + $0x28] sm:$0xff] }
  0xf5   : > { %2703 = vtanh.f32 %v698_v32  ;;  %v3576_v55 = vpop.eup %2693  ;;  %894 = vmatpush.msrb.mxu0 %v3573_v53  ;;  %v791_v32 = vld [vmem:[%s4931_s3 + $0x20] sm:$0xff] }
  0xf6   : > { %2705 = vtanh.f32 %v745_v52  ;;  %v3580_v58 = vpop.eup %2695  ;;  %941 = vmatpush.msrb.mxu1 %v3576_v55  ;;  %v794_v52 = vld [vmem:[%s4931_s3 + $0x38] sm:$0xff] }
  0xf7   : > { %2707 = vtanh.f32 %v695_v47  ;;  %v3585_v17 = vpop.eup %2697  ;;  %895 = vmatpush.msrb.mxu0 %v3580_v58  ;;  %v790_v47 = vld [vmem:[%s4931_s3 + $0x18] sm:$0xff] }
  0xf8   : > { %2709 = vtanh.f32 %v742_v34  ;;  %v3590_v27 = vpop.eup %2699  ;;  %942 = vmatpush.msrb.mxu1 %v3585_v17  ;;  %v793_v34 = vld [vmem:[%s4931_s3 + $0x30] sm:$0xff] }
  0xf9   : > { %2711 = vtanh.f32 %v692_v54  ;;  %v3595_v36 = vpop.eup %2701  ;;  %896 = vmatpush.msrb.mxu0 %v3565_v46  ;;  %v795_v54 = vld [vmem:[%s4931_s3 + $0x40] sm:$0xff] }
  0xfa   : > { %2713 = vtanh.f32 %v739_v56  ;;  %943 = vmatpush.msrb.mxu1 %v3569_v50  ;;  %v796_v56 = vld [vmem:[%s4931_s3 + $0x48] sm:$0xff] }
  0xfb   : > { %v3600_v35 = vpop.eup %2703  ;;  %2715 = vtanh.f32 %v689_v60  ;;  %897 = vmatpush.msrb.mxu0 %v3590_v27 }
  0xfc   : > { %v3605_v30 = vpop.eup %2705  ;;  %2717 = vtanh.f32 %v736_v22  ;;  %988 = vmatpush.msrb.mxu2 %v3600_v35  ;;  %944 = vmatpush.msrb.mxu1 %v3595_v36 }
  0xfd   : > { %v3611_v23 = vpop.eup %2707  ;;  %2719 = vtanh.f32 %v686_v49  ;;  %1035 = vmatpush.msrb.mxu3 %v3605_v30  ;;  %898 = vmatpush.msrb.mxu0 %v3561_v41 }
  0xfe   : > { %v3617_v24 = vpop.eup %2709  ;;  %2721 = vtanh.f32 %v733_v51  ;;  %989 = vmatpush.msrb.mxu2 %v3611_v23  ;;  %945 = vmatpush.msrb.mxu1 %v3563_v43 }
  0xff   : > { %5018 = vst [vmem:[#allocation13_spill] sm:$0xff] %v3617_v24  ;;  %v3623_v33 = vpop.eup %2711  ;;  %2723 = vtanh.f32 %v683_v37  ;;  %1036 = vmatpush.msrb.mxu3 %v3617_v24  ;;  %899 = vmatpush.msrb.mxu0 %v3555_v26 }
 0x100   : > { %5019 = vst [vmem:[#allocation14_spill] sm:$0xff] %v3623_v33  ;;  %v3629_v0 = vpop.eup %2713  ;;  %2725 = vtanh.f32 %v730_v62  ;;  %990 = vmatpush.msrb.mxu2 %v3623_v33  ;;  %946 = vmatpush.msrb.mxu1 %v3558_v38 }
 0x101   : > { %5020 = vst [vmem:[#allocation15_spill] sm:$0xff] %v3629_v0  ;;  %v3635_v29 = vpop.eup %2715  ;;  %2727 = vtanh.f32 %v680_v31  ;;  %1037 = vmatpush.msrb.mxu3 %v3629_v0  ;;  %900 = vmatpush.msrb.mxu0 %v3548_v12 }
 0x102   : > { %5021 = vst [vmem:[#allocation16_spill] sm:$0xff] %v3635_v29  ;;  %v3641_v1 = vpop.eup %2717  ;;  %2729 = vtanh.f32 %v727_v25  ;;  %991 = vmatpush.msrb.mxu2 %v3635_v29  ;;  %947 = vmatpush.msrb.mxu1 %v3552_v20 }
 0x103   : > { %5022 = vst [vmem:[#allocation17_spill] sm:$0xff] %v3641_v1  ;;  %v3647_v45 = vpop.eup %2719  ;;  %2731 = vtanh.f32 %v677_v18  ;;  %1038 = vmatpush.msrb.mxu3 %v3641_v1  ;;  %901 = vmatpush.msrb.mxu0 %v3543_v2 }
 0x104   : > { %5023 = vst [vmem:[#allocation18_spill] sm:$0xff] %v3647_v45  ;;  %v3653_v3 = vpop.eup %2721  ;;  %2733 = vtanh.f32 %v724_v19  ;;  %992 = vmatpush.msrb.mxu2 %v3647_v45  ;;  %948 = vmatpush.msrb.mxu1 %v3545_v7 }
 0x105   : > { %5024 = vst [vmem:[#allocation19_spill] sm:$0xff] %v3653_v3  ;;  %v3659_v42 = vpop.eup %2723  ;;  %2735 = vtanh.f32 %v674_v13  ;;  %1039 = vmatpush.msrb.mxu3 %v3653_v3  ;;  %902 = vmatpush.msrb.mxu0 %v3537_v61 }
 0x106   : > { %5025 = vst [vmem:[#allocation20_spill] sm:$0xff] %v3659_v42  ;;  %v3663_v5 = vpop.eup %2725  ;;  %2737 = vtanh.f32 %v721_v14  ;;  %993 = vmatpush.msrb.mxu2 %v3659_v42  ;;  %949 = vmatpush.msrb.mxu1 %v3540_v63 }
 0x107   : > { %5026 = vst [vmem:[#allocation21_spill] sm:$0xff] %v3663_v5  ;;  %v3667_v6 = vpop.eup %2727  ;;  %2739 = vtanh.f32 %v671_v9  ;;  %1040 = vmatpush.msrb.mxu3 %v3663_v5  ;;  %903 = vmatpush.msrb.mxu0 %v3531_v57 }
 0x108   : > { %5027 = vst [vmem:[#allocation22_spill] sm:$0xff] %v3667_v6  ;;  %v3674_v4 = vpop.eup %2729  ;;  %2741 = vtanh.f32 %v718_v10  ;;  %994 = vmatpush.msrb.mxu2 %v3667_v6  ;;  %950 = vmatpush.msrb.mxu1 %v3534_v59 }
 0x109   : > { %5028 = vst [vmem:[#allocation23_spill] sm:$0xff] %v3674_v4  ;;  %v3678_v8 = vpop.eup %2731  ;;  %1041 = vmatpush.msrb.mxu3 %v3674_v4  ;;  %2450 = vmatmul.msk.f32.vlgmr.msrb.gmra.mxu0 %vm857_vm2, %v787_v39 }
 0x10a   : > { %5029 = vst [vmem:[#allocation24_spill] sm:$0xff] %v3678_v8  ;;  %v3682_v11 = vpop.eup %2733  ;;  %2460 = vmatmul.msk.f32.vlgmr.msrb.gmra.mxu1 %vm857_vm2, %v787_v39  ;;  %995 = vmatpush.msrb.mxu2 %v3678_v8 }
 0x10b   : > { %5030 = vst [vmem:[#allocation25_spill] sm:$0xff] %v3682_v11  ;;  %v3686_v15 = vpop.eup %2735  ;;  %1042 = vmatpush.msrb.mxu3 %v3682_v11 }
 0x10c   : > { %5031 = vst [vmem:[#allocation26_spill] sm:$0xff] %v3686_v15  ;;  %v3690_v16 = vpop.eup %2737  ;;  %996 = vmatpush.msrb.mxu2 %v3686_v15 }
 0x10d   : > { %5032 = vst [vmem:[#allocation27_spill] sm:$0xff] %v3690_v16  ;;  %v3692_v21 = vpop.eup %2739  ;;  %1043 = vmatpush.msrb.mxu3 %v3690_v16 }
 0x10e   : > { %5033 = vst [vmem:[#allocation28_spill] sm:$0xff] %v3692_v21  ;;  %v3696_v28 = vpop.eup %2741  ;;  %997 = vmatpush.msrb.mxu2 %v3692_v21 }
 0x10f   : > { %5034 = vst [vmem:[#allocation29_spill] sm:$0xff] %v3696_v28  ;;  %1044 = vmatpush.msrb.mxu3 %v3696_v28  ;;  %2470 = vmatmul.msk.f32.vlgmr.msrb.gmra.mxu2 %vm857_vm2, %v787_v39 }
 0x110   : > { %2480 = vmatmul.msk.f32.vlgmr.msrb.gmra.mxu3 %vm857_vm2, %v787_v39  ;;  %v3777_v39 = vpop.permute.xlu1 %854 }
 0x111   : > { %2451 = vmatmul.msk.f32.gmra.mxu0 %vm857_vm2, %v788_v40 }
 0x112   : > { %2461 = vmatmul.msk.f32.gmra.mxu1 %vm857_vm2, %v788_v40 }
 0x117   : > { %2471 = vmatmul.msk.f32.gmra.mxu2 %vm857_vm2, %v788_v40 }
 0x118   : > { %2481 = vmatmul.msk.f32.gmra.mxu3 %vm857_vm2, %v788_v40 }
 0x119   : > { %2452 = vmatmul.msk.f32.gmra.mxu0 %vm857_vm2, %v789_v44 }
 0x11a   : > { %2462 = vmatmul.msk.f32.gmra.mxu1 %vm857_vm2, %v789_v44 }
 0x11f   : > { %2472 = vmatmul.msk.f32.gmra.mxu2 %vm857_vm2, %v789_v44 }
 0x120   : > { %2482 = vmatmul.msk.f32.gmra.mxu3 %vm857_vm2, %v789_v44 }
 0x121   : > { %2453 = vmatmul.msk.f32.gmra.mxu0 %vm857_vm2, %v790_v47 }
 0x122   : > { %2463 = vmatmul.msk.f32.gmra.mxu1 %vm857_vm2, %v790_v47 }
 0x127   : > { %2473 = vmatmul.msk.f32.gmra.mxu2 %vm857_vm2, %v790_v47 }
 0x128   : > { %2483 = vmatmul.msk.f32.gmra.mxu3 %vm857_vm2, %v790_v47 }
 0x129   : > { %2454 = vmatmul.msk.f32.gmra.mxu0 %vm857_vm2, %v791_v32 }
 0x12a   : > { %2464 = vmatmul.msk.f32.gmra.mxu1 %vm857_vm2, %v791_v32 }
 0x12f   : > { %2474 = vmatmul.msk.f32.gmra.mxu2 %vm857_vm2, %v791_v32 }
 0x130   : > { %2484 = vmatmul.msk.f32.gmra.mxu3 %vm857_vm2, %v791_v32 }
 0x131   : > { %2455 = vmatmul.msk.f32.gmra.mxu0 %vm857_vm2, %v792_v48 }
 0x132   : > { %2465 = vmatmul.msk.f32.gmra.mxu1 %vm857_vm2, %v792_v48 }
 0x137   : > { %2475 = vmatmul.msk.f32.gmra.mxu2 %vm857_vm2, %v792_v48 }
 0x138   : > { %2485 = vmatmul.msk.f32.gmra.mxu3 %vm857_vm2, %v792_v48  ;;  %v3787_v48 = vpop.permute.xlu1 %839 }
 0x139   : > { %2456 = vmatmul.msk.f32.gmra.mxu0 %vm857_vm2, %v793_v34 }
 0x13a   : > { %2466 = vmatmul.msk.f32.gmra.mxu1 %vm857_vm2, %v793_v34 }
 0x13f   : > { %2476 = vmatmul.msk.f32.gmra.mxu2 %vm857_vm2, %v793_v34 }
 0x140   : > { %2486 = vmatmul.msk.f32.gmra.mxu3 %vm857_vm2, %v793_v34  ;;  %v3801_v11 = vpop.permute.xlu1 %824 }
 0x141   : > { %2457 = vmatmul.msk.f32.gmra.mxu0 %vm857_vm2, %v794_v52 }
 0x142   : > { %2467 = vmatmul.msk.f32.gmra.mxu1 %vm857_vm2, %v794_v52 }
 0x147   : > { %2477 = vmatmul.msk.f32.gmra.mxu2 %vm857_vm2, %v794_v52 }
 0x148   : > { %2487 = vmatmul.msk.f32.gmra.mxu3 %vm857_vm2, %v794_v52  ;;  %v3811_v45 = vpop.permute.xlu1 %809 }
 0x149   : > { %2458 = vmatmul.msk.f32.gmra.mxu0 %vm857_vm2, %v795_v54  ;;  %5038 = vst [vmem:[#allocation33_spill] sm:$0xff] %v3811_v45 }
 0x14a   : > { %2468 = vmatmul.msk.f32.gmra.mxu1 %vm857_vm2, %v795_v54 }
 0x14f   : > { %2478 = vmatmul.msk.f32.gmra.mxu2 %vm857_vm2, %v795_v54 }
 0x150   : > { %2488 = vmatmul.msk.f32.gmra.mxu3 %vm857_vm2, %v795_v54  ;;  %v3793_v54 = vpop.permute.xlu0 %844 }
 0x151   : > { %2459 = vmatmul.msk.f32.gmra.mxu0 %vm857_vm2, %v796_v56 }
 0x152   : > { %2469 = vmatmul.msk.f32.gmra.mxu1 %vm857_vm2, %v796_v56 }
 0x157   : > { %2479 = vmatmul.msk.f32.gmra.mxu2 %vm857_vm2, %v796_v56 }
 0x158   : > { %2489 = vmatmul.msk.f32.gmra.mxu3 %vm857_vm2, %v796_v56  ;;  %v3795_v56 = vpop.permute.xlu2 %849  ;;  %v3803_v8 = vpop.permute.xlu0 %829 }
 0x160   : > { %v3809_v5 = vpop.permute.xlu2 %834  ;;  %v3818_v57 = vpop.permute.xlu0 %814 }
 0x168   : > { %v3821_v0 = vpop.permute.xlu2 %819 }
 0x186   : > { %v905_v60 = vpop.f32.mrf.mxu0 }
 0x187   : > { %v952_v22 = vpop.f32.mrf.mxu1  ;;  %v906_v29 = vadd.f32 %v905_v60, %v3811_v45 }
 0x189   : > { %2743 = vtanh.f32 %v906_v29 }
 0x18e   : > { %v908_v49 = vpop.f32.mrf.mxu0 }
 0x18f   : > { %v955_v51 = vpop.f32.mrf.mxu1  ;;  %v909_v63 = vadd.f32 %v908_v49, %v3818_v57 }
 0x192   : > { %v3765_v37 = vpop.f32.mrf.mxu2 }
 0x193   : > { %5035 = vst [vmem:[#allocation30_spill] sm:$0xff] %v3765_v37  ;;  %v3767_v62 = vpop.f32.mrf.mxu3  ;;  %v956_v37 = vadd.f32 %v955_v51, %v3818_v57  ;;  %v3833_v51 = vpop.eup %2743 }
 0x194   : > { %5036 = vst [vmem:[#allocation31_spill] sm:$0xff] %v3767_v62  ;;  %v953_v62 = vadd.f32 %v952_v22, %v3811_v45 }
 0x195   : > { %5039 = vst [vmem:[#allocation34_spill] sm:$0xff] %v3833_v51 }
 0x196   : > { %v911_v31 = vpop.f32.mrf.mxu0  ;;  %2745 = vtanh.f32 %v953_v62 }
 0x197   : > { %v958_v25 = vpop.f32.mrf.mxu1  ;;  %2747 = vtanh.f32 %v909_v63 }
 0x198   : > { %v959_v24 = vadd.f32 %v958_v25, %v3821_v0  ;;  %2749 = vtanh.f32 %v956_v37 }
 0x19a   : > { %v3769_v18 = vpop.f32.mrf.mxu2 }
 0x19b   : > { %v3771_v19 = vpop.f32.mrf.mxu3 }
 0x19c   : > { %5037 = vst [vmem:[#allocation32_spill] sm:$0xff] %v3771_v19  ;;  %v912_v19 = vadd.f32 %v911_v31, %v3821_v0  ;;  %v3835_v62 = vpop.eup %2745 }
 0x19d   : > { %5040 = vst [vmem:[#allocation35_spill] sm:$0xff] %v3835_v62  ;;  %v3837_v37 = vpop.eup %2747 }
 0x19e   : > { %v914_v13 = vpop.f32.mrf.mxu0  ;;  %2751 = vtanh.f32 %v912_v19 }
 0x19f   : > { %v961_v14 = vpop.f32.mrf.mxu1  ;;  %v915_v60 = vadd.f32 %v914_v13, %v3801_v11  ;;  %2753 = vtanh.f32 %v959_v24  ;;  %v3842_v24 = vpop.eup %2749 }
 0x1a0   : > { %v962_v22 = vadd.f32 %v961_v14, %v3801_v11 }
 0x1a1   : > { %2755 = vtanh.f32 %v915_v60 }
 0x1a2   : > { %v3773_v9 = vpop.f32.mrf.mxu2  ;;  %2757 = vtanh.f32 %v962_v22 }
 0x1a3   : > { %v3775_v10 = vpop.f32.mrf.mxu3 }
 0x1a4   : > { %v3845_v13 = vpop.eup %2751 }
 0x1a5   : > { %v3848_v60 = vpop.eup %2753 }
 0x1a6   : > { %v3779_v40 = vpop.f32.mrf.mxu0 }
 0x1a7   : > { %v3781_v44 = vpop.f32.mrf.mxu1 }
 0x1aa   : > { %v3783_v47 = vpop.f32.mrf.mxu2 }
 0x1ab   : > { %v3785_v32 = vpop.f32.mrf.mxu3 }
 0x1ae   : > { %v3789_v34 = vpop.f32.mrf.mxu0 }
 0x1af   : > { %v3791_v52 = vpop.f32.mrf.mxu1 }
 0x1b2   : > { %v3797_v28 = vpop.f32.mrf.mxu2 }
 0x1b3   : > { %v3799_v21 = vpop.f32.mrf.mxu3 }
 0x1b6   : > { %v923_v16 = vpop.f32.mrf.mxu0 }
 0x1b7   : > { %v970_v15 = vpop.f32.mrf.mxu1  ;;  %v924_v14 = vadd.f32 %v923_v16, %v3787_v48 }
 0x1b8   : > { %v971_v22 = vadd.f32 %v970_v15, %v3787_v48 }
 0x1ba   : > { %v3805_v4 = vpop.f32.mrf.mxu2 }
 0x1bb   : > { %v3807_v6 = vpop.f32.mrf.mxu3 }
 0x1be   : > { %v926_v42 = vpop.f32.mrf.mxu0 }
 0x1bf   : > { %v973_v3 = vpop.f32.mrf.mxu1  ;;  %v927_v25 = vadd.f32 %v926_v42, %v3793_v54 }
 0x1c2   : > { %v3813_v1 = vpop.f32.mrf.mxu2 }
 0x1c3   : > { %v3815_v59 = vpop.f32.mrf.mxu3 }
 0x1c6   : > { %v929_v33 = vpop.f32.mrf.mxu0 }
 0x1c7   : > { %v976_v61 = vpop.f32.mrf.mxu1  ;;  %v930_v49 = vadd.f32 %v929_v33, %v3795_v56 }
 0x1c8   : > { %v977_v29 = vadd.f32 %v976_v61, %v3795_v56  ;;  %v974_v61 = vadd.f32 %v973_v3, %v3793_v54 }
 0x1c9   : > { %2759 = vtanh.f32 %v930_v49 }
 0x1ca   : > { %v1020_v45 = vpop.f32.mrf.mxu2  ;;  %2761 = vtanh.f32 %v977_v29  ;;  %v968_v29 = vadd.f32 %v3791_v52, %v3809_v5 }
 0x1cb   : > { %v3829_v7 = vpop.f32.mrf.mxu3 }
 0x1ce   : > { %v932_v63 = vpop.f32.mrf.mxu0 }
 0x1cf   : > { %v979_v31 = vpop.f32.mrf.mxu1  ;;  %v933_v19 = vadd.f32 %v932_v63, %v3777_v39  ;;  %v3851_v63 = vpop.eup %2755 }
 0x1d0   : > { %v980_v33 = vadd.f32 %v979_v31, %v3777_v39  ;;  %v921_v31 = vadd.f32 %v3789_v34, %v3809_v5  ;;  %v3855_v3 = vpop.eup %2757 }
 0x1d1   : > { %2763 = vtanh.f32 %v933_v19  ;;  %v2760_v16 = vpop.eup %2759  ;;  %v918_v19 = vadd.f32 %v3779_v40, %v3803_v8 }
 0x1d2   : > { %2765 = vtanh.f32 %v980_v33  ;;  %v1023_v42 = vpop.f32.mrf.mxu2  ;;  %v2762_v15 = vpop.eup %2761  ;;  %v965_v33 = vadd.f32 %v3781_v44, %v3803_v8  ;;  %v1021_v44 = vadd.f32 %v1020_v45, %v3793_v54  ;;  %v1068_v45 = vadd.f32 %v3829_v7, %v3793_v54 }
 0x1d3   : > { %v1070_v49 = vpop.f32.mrf.mxu3  ;;  %2767 = vtanh.f32 %v927_v25  ;;  %v1024_v34 = vadd.f32 %v1023_v42, %v3795_v56  ;;  %v3874_v42 = vadd.f32 %v2760_v16, %v3580_v58  ;;  %v1018_v16 = vadd.f32 %v3813_v1, %v3787_v48 }
 0x1d4   : > { %2769 = vtanh.f32 %v974_v61  ;;  %v1071_v51 = vadd.f32 %v1070_v49, %v3795_v56  ;;  %v1065_v7 = vadd.f32 %v3815_v59, %v3787_v48  ;;  %v1015_v1 = vadd.f32 %v3805_v4, %v3809_v5 }
 0x1d5   : > { %2771 = vtanh.f32 %v924_v14  ;;  %v1062_v59 = vadd.f32 %v3807_v6, %v3809_v5  ;;  %v1012_v4 = vadd.f32 %v3797_v28, %v3803_v8  ;;  %v1059_v5 = vadd.f32 %v3799_v21, %v3803_v8 }
 0x1d6   : > { %2773 = vtanh.f32 %v971_v22  ;;  %v1009_v28 = vadd.f32 %v3783_v47, %v3801_v11  ;;  %v1056_v8 = vadd.f32 %v3785_v32, %v3801_v11 }
 0x1d7   : > { %v2764_v62 = vpop.eup %2763  ;;  %2775 = vtanh.f32 %v921_v31 }
 0x1d8   : > { %v2766_v25 = vpop.eup %2765  ;;  %2777 = vtanh.f32 %v968_v29  ;;  %v3866_v52 = vadd.f32 %v2764_v62, %v3573_v53 }
 0x1d9   : > { %v2768_v61 = vpop.eup %2767  ;;  %2779 = vtanh.f32 %v918_v19  ;;  %v3869_v40 = vadd.f32 %v2766_v25, %v3576_v55  ;;  %v3880_v55 = vadd.f32 %v2762_v15, %v3585_v17  ;;  %v5048_v25 = vld [vmem:[#allocation14_spill] sm:$0xff] }
 0x1da   : > { %v2770_v14 = vpop.eup %2769  ;;  %2781 = vtanh.f32 %v965_v33  ;;  %v1026_v22 = vpop.f32.mrf.mxu2  ;;  %1262 = vmatpush.msra.mxu0 %v3866_v52  ;;  %v3886_v58 = vadd.f32 %v2768_v61, %v3565_v46  ;;  %v1006_v33 = vadd.f32 %v3773_v9, %v3821_v0 }
 0x1db   : > { %v1073_v31 = vpop.f32.mrf.mxu3  ;;  %v2772_v56 = vpop.eup %2771  ;;  %2783 = vtanh.f32 %v1024_v34  ;;  %v1027_v53 = vadd.f32 %v1026_v22, %v3777_v39  ;;  %1309 = vmatpush.msra.mxu1 %v3869_v40  ;;  %v3892_v17 = vadd.f32 %v2770_v14, %v3569_v50  ;;  %v5050_v14 = vld [vmem:[#allocation33_spill] sm:$0xff] }
 0x1dc   : > { %v1074_v62 = vadd.f32 %v1073_v31, %v3777_v39  ;;  %v2774_v49 = vpop.eup %2773  ;;  %2785 = vtanh.f32 %v1071_v51  ;;  %1263 = vmatpush.msra.mxu0 %v3874_v42  ;;  %v3898_v46 = vadd.f32 %v2772_v56, %v3590_v27  ;;  %v5053_v56 = vld [vmem:[#allocation15_spill] sm:$0xff] }
 0x1dd   : > { %v2776_v29 = vpop.eup %2775  ;;  %2787 = vtanh.f32 %v1027_v53  ;;  %1310 = vmatpush.msra.mxu1 %v3880_v55  ;;  %v3904_v50 = vadd.f32 %v2774_v49, %v3595_v36 }
 0x1de   : > { %v2778_v39 = vpop.eup %2777  ;;  %2789 = vtanh.f32 %v1074_v62  ;;  %1264 = vmatpush.msra.mxu0 %v3886_v58  ;;  %v3910_v27 = vadd.f32 %v2776_v29, %v3561_v41  ;;  %v5055_v62 = vld [vmem:[#allocation31_spill] sm:$0xff]  ;;  %v5057_v29 = vld [vmem:[#allocation34_spill] sm:$0xff] }
 0x1df   : > { %v2780_v54 = vpop.eup %2779  ;;  %2791 = vtanh.f32 %v1021_v44  ;;  %1311 = vmatpush.msra.mxu1 %v3892_v17  ;;  %v3916_v36 = vadd.f32 %v2778_v39, %v3563_v43  ;;  %v5051_v44 = vld [vmem:[#allocation30_spill] sm:$0xff]  ;;  %v1047_v49 = vadd.f32 %v5055_v62, %v5050_v14  ;;  %v5058_v39 = vld [vmem:[#allocation16_spill] sm:$0xff] }
 0x1e0   : > { %v2782_v51 = vpop.eup %2781  ;;  %2793 = vtanh.f32 %v1068_v45  ;;  %1265 = vmatpush.msra.mxu0 %v3898_v46  ;;  %v3922_v41 = vadd.f32 %v2780_v54, %v3555_v26  ;;  %v3935_v26 = vadd.f32 %v3851_v63, %v3548_v12  ;;  %v1053_v12 = vadd.f32 %v3775_v10, %v3821_v0  ;;  %v5043_v0 = vld [vmem:[#allocation12_spill] sm:$0xff]  ;;  %v5044_v63 = vld [vmem:[#allocation13_spill] sm:$0xff]  ;;  %v5081_v62 = vld [vmem:[#allocation26_spill] sm:$0xff] }
 0x1e1   : > { %v2784_v48 = vpop.eup %2783  ;;  %2795 = vtanh.f32 %v1018_v16  ;;  %1312 = vmatpush.msra.mxu1 %v3904_v50  ;;  %v3928_v43 = vadd.f32 %v2782_v51, %v3558_v38  ;;  %v3945_v38 = vadd.f32 %v3855_v3, %v3552_v20  ;;  %v3967_v10 = vadd.f32 %v3848_v60, %v5043_v0  ;;  %v5056_v45 = vld [vmem:[#allocation8_spill] sm:$0xff]  ;;  %v5060_v54 = vld [vmem:[#allocation9_spill] sm:$0xff] }
 0x1e2   : > { %v2786_v19 = vpop.eup %2785  ;;  %2797 = vtanh.f32 %v1065_v7  ;;  %1266 = vmatpush.msra.mxu0 %v3910_v27  ;;  %v3959_v9 = vadd.f32 %v2784_v48, %v3611_v23  ;;  %v5046_v23 = vld [vmem:[#allocation32_spill] sm:$0xff]  ;;  %v1000_v22 = vadd.f32 %v5051_v44, %v5050_v14  ;;  %v4000_v16 = vadd.f32 %v5057_v29, %v5056_v45  ;;  %v5083_v45 = vld [vmem:[#allocation27_spill] sm:$0xff] }
 0x1e3   : > { %v2788_v6 = vpop.eup %2787  ;;  %2799 = vtanh.f32 %v1015_v1  ;;  %1313 = vmatpush.msra.mxu1 %v3916_v36  ;;  %v3970_v3 = vadd.f32 %v2786_v19, %v5044_v63  ;;  %v5061_v1 = vld [vmem:[#allocation35_spill] sm:$0xff]  ;;  %v5077_v14 = vld [vmem:[#allocation24_spill] sm:$0xff] }
 0x1e4   : > { %v2790_v15 = vpop.eup %2789  ;;  %2801 = vtanh.f32 %v1062_v59  ;;  %1267 = vmatpush.msra.mxu0 %v3922_v41  ;;  %v3938_v21 = vadd.f32 %v2788_v6, %v3600_v35  ;;  %v3956_v35 = vadd.f32 %v3845_v13, %v3543_v2  ;;  %5042 = vst [vmem:[#allocation37_spill] sm:$0xff] %v3959_v9  ;;  %v1050_v13 = vadd.f32 %v5046_v23, %v3818_v57  ;;  %v5063_v59 = vld [vmem:[#allocation17_spill] sm:$0xff]  ;;  %v5065_v6 = vld [vmem:[#allocation18_spill] sm:$0xff] }
 0x1e5   : > { %v2792_v47 = vpop.eup %2791  ;;  %2803 = vtanh.f32 %v1012_v4  ;;  %1314 = vmatpush.msra.mxu1 %v3928_v43  ;;  %v3948_v11 = vadd.f32 %v2790_v15, %v3605_v30  ;;  %v1003_v30 = vadd.f32 %v3769_v18, %v3818_v57  ;;  %5045 = vst [vmem:[#allocation12_spill] sm:$0xff] %v3970_v3  ;;  %v5047_v18 = vld [vmem:[#allocation10_spill] sm:$0xff]  ;;  %v5052_v57 = vld [vmem:[#allocation11_spill] sm:$0xff]  ;;  %v4009_v51 = vadd.f32 %v5061_v1, %v5060_v54  ;;  %v5087_v54 = vld [vmem:[#allocation29_spill] sm:$0xff] }
 0x1e6   : > { %v2794_v32 = vpop.eup %2793  ;;  %2805 = vtanh.f32 %v1059_v5  ;;  %1268 = vmatpush.msra.mxu0 %v3935_v26  ;;  %1356 = vmatpush.msra.mxu2 %v3938_v21  ;;  %v3978_v34 = vadd.f32 %v3837_v37, %v5047_v18  ;;  %v3981_v61 = vadd.f32 %v2792_v47, %v5048_v25  ;;  %v3989_v31 = vadd.f32 %v3842_v24, %v5052_v57  ;;  %v1156_v4 = vld [vmem:[%s4933_s5] sm:$0xff] }
 0x1e7   : > { %5041 = vst [vmem:[#allocation36_spill] sm:$0xff] %v3948_v11  ;;  %v2796_v20 = vpop.eup %2795  ;;  %2807 = vtanh.f32 %v1009_v28  ;;  %1315 = vmatpush.msra.mxu1 %v3945_v38  ;;  %1403 = vmatpush.msra.mxu3 %v3948_v11  ;;  %v3992_v53 = vadd.f32 %v2794_v32, %v5053_v56  ;;  %v5067_v15 = vld [vmem:[#allocation19_spill] sm:$0xff]  ;;  %v5069_v32 = vld [vmem:[#allocation20_spill] sm:$0xff] }
 0x1e8   : > { %v2798_v2 = vpop.eup %2797  ;;  %2809 = vtanh.f32 %v1056_v8  ;;  %1269 = vmatpush.msra.mxu0 %v3956_v35  ;;  %1357 = vmatpush.msra.mxu2 %v3959_v9  ;;  %5049 = vst [vmem:[#allocation13_spill] sm:$0xff] %v3981_v61  ;;  %v4003_v7 = vadd.f32 %v2796_v20, %v5058_v39  ;;  %v5071_v20 = vld [vmem:[#allocation21_spill] sm:$0xff]  ;;  %v1157_v56 = vld [vmem:[%s4933_s5 + $0x8] sm:$0xff] }
 0x1e9   : > { %v2800_v60 = vpop.eup %2799  ;;  %2811 = vtanh.f32 %v1006_v33  ;;  %1316 = vmatpush.msra.mxu1 %v3967_v10  ;;  %1404 = vmatpush.msra.mxu3 %v3970_v3  ;;  %5054 = vst [vmem:[#allocation32_spill] sm:$0xff] %v3992_v53  ;;  %v4012_v48 = vadd.f32 %v2798_v2, %v5063_v59  ;;  %v5073_v2 = vld [vmem:[#allocation22_spill] sm:$0xff]  ;;  %v5085_v39 = vld [vmem:[#allocation28_spill] sm:$0xff]  ;;  %v1158_v59 = vld [vmem:[%s4933_s5 + $0x10] sm:$0xff] }
 0x1ea   : > { %v2802_v37 = vpop.eup %2801  ;;  %2813 = vtanh.f32 %v1053_v12  ;;  %1270 = vmatpush.msra.mxu0 %v3978_v34  ;;  %1358 = vmatpush.msra.mxu2 %v3981_v61  ;;  %5059 = vst [vmem:[#allocation10_spill] sm:$0xff] %v4003_v7  ;;  %v4022_v28 = vadd.f32 %v2800_v60, %v5065_v6  ;;  %v1162_v6 = vld [vmem:[%s4933_s5 + $0x30] sm:$0xff] }
 0x1eb   : > { %v2804_v24 = vpop.eup %2803  ;;  %2815 = vtanh.f32 %v1003_v30  ;;  %1317 = vmatpush.msra.mxu1 %v3989_v31  ;;  %1405 = vmatpush.msra.mxu3 %v3992_v53  ;;  %5062 = vst [vmem:[#allocation14_spill] sm:$0xff] %v4009_v51  ;;  %v4025_v8 = vadd.f32 %v2802_v37, %v5067_v15  ;;  %v1163_v15 = vld [vmem:[%s4933_s5 + $0x38] sm:$0xff] }
 0x1ec   : > { %5064 = vst [vmem:[#allocation33_spill] sm:$0xff] %v4012_v48  ;;  %v2806_v19 = vpop.eup %2805  ;;  %2817 = vtanh.f32 %v1050_v13  ;;  %1271 = vmatpush.msra.mxu0 %v4000_v16  ;;  %1359 = vmatpush.msra.mxu2 %v4003_v7  ;;  %v4032_v12 = vadd.f32 %v2804_v24, %v5069_v32  ;;  %v5075_v13 = vld [vmem:[#allocation23_spill] sm:$0xff] }
 0x1ed   : > { %v2808_v5 = vpop.eup %2807  ;;  %2819 = vtanh.f32 %v1000_v22  ;;  %1318 = vmatpush.msra.mxu1 %v4009_v51  ;;  %1406 = vmatpush.msra.mxu3 %v4012_v48  ;;  %5066 = vst [vmem:[#allocation30_spill] sm:$0xff] %v4022_v28  ;;  %v4035_v30 = vadd.f32 %v2806_v19, %v5071_v20  ;;  %v5079_v22 = vld [vmem:[#allocation25_spill] sm:$0xff]  ;;  %v1159_v19 = vld [vmem:[%s4933_s5 + $0x18] sm:$0xff] }
 0x1ee   : > { %5068 = vst [vmem:[#allocation11_spill] sm:$0xff] %v4025_v8  ;;  %v2810_v47 = vpop.eup %2809  ;;  %2821 = vtanh.f32 %v1047_v49  ;;  %2490 = vmatmul.msk.f32.vlgmr.msra.gmra.mxu0 %vm857_vm2, %v1156_v4  ;;  %2500 = vmatmul.msk.f32.vlgmr.msra.gmra.mxu1 %vm857_vm2, %v1156_v4  ;;  %v4040_v23 = vadd.f32 %v2808_v5, %v5073_v2  ;;  %v1161_v5 = vld [vmem:[%s4933_s5 + $0x28] sm:$0xff] }
 0x1ef   : > { %v2812_v33 = vpop.eup %2811  ;;  %1360 = vmatpush.msra.mxu2 %v4022_v28  ;;  %1407 = vmatpush.msra.mxu3 %v4025_v8  ;;  %5070 = vst [vmem:[#allocation15_spill] sm:$0xff] %v4032_v12  ;;  %v4043_v18 = vadd.f32 %v2810_v47, %v5075_v13  ;;  %v1164_v47 = vld [vmem:[%s4933_s5 + $0x40] sm:$0xff] }
 0x1f0   : > { %5072 = vst [vmem:[#allocation31_spill] sm:$0xff] %v4035_v30  ;;  %v2814_v0 = vpop.eup %2813  ;;  %v4048_v44 = vadd.f32 %v2812_v33, %v5077_v14  ;;  %v1165_v33 = vld [vmem:[%s4933_s5 + $0x48] sm:$0xff] }
 0x1f1   : > { %v2816_v63 = vpop.eup %2815  ;;  %1361 = vmatpush.msra.mxu2 %v4032_v12  ;;  %1408 = vmatpush.msra.mxu3 %v4035_v30  ;;  %5074 = vst [vmem:[#allocation8_spill] sm:$0xff] %v4040_v23  ;;  %v4051_v57 = vadd.f32 %v2814_v0, %v5079_v22  ;;  %v4182_v30 = vpop.permute.xlu1 %1213 }
 0x1f2   : > { %5076 = vst [vmem:[#allocation34_spill] sm:$0xff] %v4043_v18  ;;  %v2818_v25 = vpop.eup %2817  ;;  %v4059_v49 = vadd.f32 %v2816_v63, %v5081_v62 }
 0x1f3   : > { %v2820_v60 = vpop.eup %2819  ;;  %1362 = vmatpush.msra.mxu2 %v4040_v23  ;;  %1409 = vmatpush.msra.mxu3 %v4043_v18  ;;  %5078 = vst [vmem:[#allocation16_spill] sm:$0xff] %v4048_v44  ;;  %v4062_v29 = vadd.f32 %v2818_v25, %v5083_v45 }
 0x1f4   : > { %5080 = vst [vmem:[#allocation9_spill] sm:$0xff] %v4051_v57  ;;  %v2822_v37 = vpop.eup %2821  ;;  %v4069_v24 = vadd.f32 %v2820_v60, %v5085_v39 }
 0x1f5   : > { %1363 = vmatpush.msra.mxu2 %v4048_v44  ;;  %1410 = vmatpush.msra.mxu3 %v4051_v57  ;;  %5082 = vst [vmem:[#allocation35_spill] sm:$0xff] %v4059_v49  ;;  %v4072_v1 = vadd.f32 %v2822_v37, %v5087_v54  ;;  %v4176_v44 = vpop.permute.xlu0 %1218 }
 0x1f6   : > { %5084 = vst [vmem:[#allocation17_spill] sm:$0xff] %v4062_v29  ;;  %2491 = vmatmul.msk.f32.gmra.mxu0 %vm857_vm2, %v1157_v56  ;;  %2501 = vmatmul.msk.f32.gmra.mxu1 %vm857_vm2, %v1157_v56 }
 0x1f7   : > { %1364 = vmatpush.msra.mxu2 %v4059_v49  ;;  %1411 = vmatpush.msra.mxu3 %v4062_v29  ;;  %5086 = vst [vmem:[#allocation18_spill] sm:$0xff] %v4069_v24 }
 0x1f8   : > { %5088 = vst [vmem:[#allocation19_spill] sm:$0xff] %v4072_v1 }
 0x1f9   : > { %1365 = vmatpush.msra.mxu2 %v4069_v24  ;;  %1412 = vmatpush.msra.mxu3 %v4072_v1 }
 0x1fa   : > { %2510 = vmatmul.msk.f32.vlgmr.msra.gmra.mxu2 %vm857_vm2, %v1156_v4  ;;  %2520 = vmatmul.msk.f32.vlgmr.msra.gmra.mxu3 %vm857_vm2, %v1156_v4  ;;  %v1160_v4 = vld [vmem:[%s4933_s5 + $0x20] sm:$0xff] }
 0x1fe   : > { %2492 = vmatmul.msk.f32.gmra.mxu0 %vm857_vm2, %v1158_v59  ;;  %2502 = vmatmul.msk.f32.gmra.mxu1 %vm857_vm2, %v1158_v59 }
 0x202   : > { %2511 = vmatmul.msk.f32.gmra.mxu2 %vm857_vm2, %v1157_v56  ;;  %2521 = vmatmul.msk.f32.gmra.mxu3 %vm857_vm2, %v1157_v56 }
 0x206   : > { %2493 = vmatmul.msk.f32.gmra.mxu0 %vm857_vm2, %v1159_v19  ;;  %2503 = vmatmul.msk.f32.gmra.mxu1 %vm857_vm2, %v1159_v19 }
 0x20a   : > { %2512 = vmatmul.msk.f32.gmra.mxu2 %vm857_vm2, %v1158_v59  ;;  %2522 = vmatmul.msk.f32.gmra.mxu3 %vm857_vm2, %v1158_v59  ;;  %v4162_v59 = vpop.permute.xlu2 %1223 }
 0x20e   : > { %2494 = vmatmul.msk.f32.gmra.mxu0 %vm857_vm2, %v1160_v4  ;;  %2504 = vmatmul.msk.f32.gmra.mxu1 %vm857_vm2, %v1160_v4 }
 0x212   : > { %2513 = vmatmul.msk.f32.gmra.mxu2 %vm857_vm2, %v1159_v19  ;;  %2523 = vmatmul.msk.f32.gmra.mxu3 %vm857_vm2, %v1159_v19 }
 0x216   : > { %2495 = vmatmul.msk.f32.gmra.mxu0 %vm857_vm2, %v1161_v5  ;;  %2505 = vmatmul.msk.f32.gmra.mxu1 %vm857_vm2, %v1161_v5 }
 0x21a   : > { %2514 = vmatmul.msk.f32.gmra.mxu2 %vm857_vm2, %v1160_v4  ;;  %2524 = vmatmul.msk.f32.gmra.mxu3 %vm857_vm2, %v1160_v4 }
 0x21e   : > { %2496 = vmatmul.msk.f32.gmra.mxu0 %vm857_vm2, %v1162_v6  ;;  %2506 = vmatmul.msk.f32.gmra.mxu1 %vm857_vm2, %v1162_v6 }
 0x222   : > { %2515 = vmatmul.msk.f32.gmra.mxu2 %vm857_vm2, %v1161_v5  ;;  %2525 = vmatmul.msk.f32.gmra.mxu3 %vm857_vm2, %v1161_v5 }
 0x226   : > { %2497 = vmatmul.msk.f32.gmra.mxu0 %vm857_vm2, %v1163_v15  ;;  %2507 = vmatmul.msk.f32.gmra.mxu1 %vm857_vm2, %v1163_v15 }
 0x22a   : > { %2516 = vmatmul.msk.f32.gmra.mxu2 %vm857_vm2, %v1162_v6  ;;  %2526 = vmatmul.msk.f32.gmra.mxu3 %vm857_vm2, %v1162_v6 }
 0x22e   : > { %2498 = vmatmul.msk.f32.gmra.mxu0 %vm857_vm2, %v1164_v47  ;;  %2508 = vmatmul.msk.f32.gmra.mxu1 %vm857_vm2, %v1164_v47 }
 0x232   : > { %2517 = vmatmul.msk.f32.gmra.mxu2 %vm857_vm2, %v1163_v15  ;;  %2527 = vmatmul.msk.f32.gmra.mxu3 %vm857_vm2, %v1163_v15  ;;  %v4168_v15 = vpop.permute.xlu2 %1208 }
 0x236   : > { %2499 = vmatmul.msk.f32.gmra.mxu0 %vm857_vm2, %v1165_v33  ;;  %2509 = vmatmul.msk.f32.gmra.mxu1 %vm857_vm2, %v1165_v33 }
 0x23a   : > { %2518 = vmatmul.msk.f32.gmra.mxu2 %vm857_vm2, %v1164_v47  ;;  %2528 = vmatmul.msk.f32.gmra.mxu3 %vm857_vm2, %v1164_v47  ;;  %v4174_v29 = vpop.permute.xlu2 %1193 }
 0x242   : > { %2519 = vmatmul.msk.f32.gmra.mxu2 %vm857_vm2, %v1165_v33  ;;  %2529 = vmatmul.msk.f32.gmra.mxu3 %vm857_vm2, %v1165_v33  ;;  %v4184_v28 = vpop.permute.xlu2 %1178 }
 0x26b   : > { %v1273_v32 = vpop.f32.mrf.mxu0  ;;  %v4136_v20 = vpop.f32.mrf.mxu1 }
 0x26c   : > { %v1274_v53 = vadd.f32 %v1273_v32, %v4184_v28 }
 0x26e   : > { %2823 = vtanh.f32 %v1274_v53 }
 0x273   : > { %v4138_v0 = vpop.f32.mrf.mxu0  ;;  %v4140_v63 = vpop.f32.mrf.mxu1 }
 0x27b   : > { %v4142_v2 = vpop.f32.mrf.mxu0  ;;  %v4144_v13 = vpop.f32.mrf.mxu1 }
 0x27d   : > { %v4146_v25 = vpop.f32.mrf.mxu2  ;;  %v4148_v60 = vpop.f32.mrf.mxu3 }
 0x27e   : > { %5089 = vst [vmem:[#allocation20_spill] sm:$0xff] %v4146_v25 }
 0x27f   : > { %5090 = vst [vmem:[#allocation21_spill] sm:$0xff] %v4148_v60  ;;  %v4190_v60 = vpop.permute.xlu0 %1203 }
 0x283   : > { %v4150_v14 = vpop.f32.mrf.mxu0  ;;  %v4152_v22 = vpop.f32.mrf.mxu1 }
 0x285   : > { %v4154_v56 = vpop.f32.mrf.mxu2  ;;  %v4156_v37 = vpop.f32.mrf.mxu3 }
 0x286   : > { %5091 = vst [vmem:[#allocation22_spill] sm:$0xff] %v4154_v56  ;;  %v4196_v56 = vpop.permute.xlu1 %1198 }
 0x287   : > { %5092 = vst [vmem:[#allocation23_spill] sm:$0xff] %v4156_v37 }
 0x28b   : > { %v1285_v62 = vpop.f32.mrf.mxu0  ;;  %v1332_v45 = vpop.f32.mrf.mxu1 }
 0x28d   : > { %v4158_v39 = vpop.f32.mrf.mxu2  ;;  %v4160_v54 = vpop.f32.mrf.mxu3 }
 0x28e   : > { %5093 = vst [vmem:[#allocation24_spill] sm:$0xff] %v4160_v54 }
 0x293   : > { %v1288_v19 = vpop.f32.mrf.mxu0  ;;  %v1335_v4 = vpop.f32.mrf.mxu1 }
 0x294   : > { %v1289_v61 = vadd.f32 %v1288_v19, %v4190_v60 }
 0x295   : > { %v4164_v5 = vpop.f32.mrf.mxu2  ;;  %v4166_v6 = vpop.f32.mrf.mxu3 }
 0x296   : > { %2825 = vtanh.f32 %v1289_v61 }
 0x29b   : > { %v1291_v47 = vpop.f32.mrf.mxu0  ;;  %v1338_v33 = vpop.f32.mrf.mxu1 }
 0x29c   : > { %v1292_v61 = vadd.f32 %v1291_v47, %v4168_v15  ;;  %v1339_v53 = vadd.f32 %v1338_v33, %v4168_v15 }
 0x29d   : > { %v4170_v1 = vpop.f32.mrf.mxu2  ;;  %v4172_v24 = vpop.f32.mrf.mxu3 }
 0x2a3   : > { %v1294_v49 = vpop.f32.mrf.mxu0  ;;  %v1341_v57 = vpop.f32.mrf.mxu1 }
 0x2a4   : > { %v1295_v54 = vadd.f32 %v1294_v49, %v4182_v30  ;;  %v1342_v32 = vadd.f32 %v1341_v57, %v4182_v30  ;;  %v1336_v49 = vadd.f32 %v1335_v4, %v4190_v60  ;;  %v1283_v4 = vadd.f32 %v4150_v14, %v4174_v29 }
 0x2a5   : > { %v4178_v18 = vpop.f32.mrf.mxu2  ;;  %v4180_v23 = vpop.f32.mrf.mxu3 }
 0x2ab   : > { %v1297_v12 = vpop.f32.mrf.mxu0  ;;  %v1344_v8 = vpop.f32.mrf.mxu1 }
 0x2ac   : > { %v1298_v25 = vadd.f32 %v1297_v12, %v4176_v44  ;;  %v1345_v37 = vadd.f32 %v1344_v8, %v4176_v44  ;;  %v4208_v8 = vpop.eup %2823 }
 0x2ad   : > { %v4186_v48 = vpop.f32.mrf.mxu2  ;;  %v4188_v7 = vpop.f32.mrf.mxu3 }
 0x2ae   : > { %2827 = vtanh.f32 %v1298_v25  ;;  %v1286_v25 = vadd.f32 %v1285_v62, %v4196_v56 }
 0x2af   : > { %2829 = vtanh.f32 %v1345_v37 }
 0x2b3   : > { %v1300_v3 = vpop.f32.mrf.mxu0  ;;  %v1347_v9 = vpop.f32.mrf.mxu1 }
 0x2b4   : > { %v1301_v11 = vadd.f32 %v1300_v3, %v4162_v59  ;;  %v1348_v51 = vadd.f32 %v1347_v9, %v4162_v59  ;;  %v2826_v3 = vpop.eup %2825  ;;  %v1321_v9 = vadd.f32 %v4136_v20, %v4184_v28  ;;  %v1330_v20 = vadd.f32 %v4152_v22, %v4174_v29 }
 0x2b5   : > { %v4202_v19 = vpop.f32.mrf.mxu2  ;;  %v4204_v12 = vpop.f32.mrf.mxu3 }
 0x2b6   : > { %2831 = vtanh.f32 %v1301_v11  ;;  %v2828_v57 = vpop.eup %2827  ;;  %v1333_v11 = vadd.f32 %v1332_v45, %v4196_v56 }
 0x2b7   : > { %2833 = vtanh.f32 %v1348_v51  ;;  %v2830_v37 = vpop.eup %2829  ;;  %v4215_v51 = vpop.permute.xlu0 %1188 }
 0x2b8   : > { %2835 = vtanh.f32 %v1295_v54  ;;  %v1280_v45 = vadd.f32 %v4142_v2, %v4215_v51 }
 0x2b9   : > { %2837 = vtanh.f32 %v1342_v32 }
 0x2ba   : > { %2839 = vtanh.f32 %v1292_v61 }
 0x2bb   : > { %2841 = vtanh.f32 %v1339_v53 }
 0x2bc   : > { %v2832_v47 = vpop.eup %2831  ;;  %2843 = vtanh.f32 %v1336_v49  ;;  %v4229_v49 = vpop.permute.xlu1 %1183 }
 0x2bd   : > { %v2834_v54 = vpop.eup %2833  ;;  %2845 = vtanh.f32 %v1321_v9  ;;  %v1391_v33 = vpop.f32.mrf.mxu2  ;;  %v4222_v62 = vadd.f32 %v2832_v47, %v3866_v52  ;;  %v1327_v9 = vadd.f32 %v4144_v13, %v4215_v51  ;;  %v4235_v52 = vadd.f32 %v2828_v57, %v3874_v42 }
 0x2be   : > { %v1438_v32 = vpop.f32.mrf.mxu3  ;;  %v2836_v61 = vpop.eup %2835  ;;  %2847 = vtanh.f32 %v1286_v25  ;;  %v4227_v53 = vadd.f32 %v2834_v54, %v3869_v40  ;;  %v1277_v2 = vadd.f32 %v4138_v0, %v4229_v49  ;;  %v4241_v40 = vadd.f32 %v2830_v37, %v3880_v55 }
 0x2bf   : > { %v2838_v14 = vpop.eup %2837  ;;  %2849 = vtanh.f32 %v1333_v11  ;;  %1630 = vmatpush.msrb.mxu0 %v4222_v62  ;;  %v1324_v13 = vadd.f32 %v4140_v63, %v4229_v49  ;;  %v4247_v42 = vadd.f32 %v2836_v61, %v3886_v58  ;;  %v1392_v0 = vadd.f32 %v1391_v33, %v4176_v44 }
 0x2c0   : > { %v2840_v22 = vpop.eup %2839  ;;  %2851 = vtanh.f32 %v1283_v4  ;;  %1677 = vmatpush.msrb.mxu1 %v4227_v53  ;;  %v4252_v11 = vadd.f32 %v2838_v14, %v3892_v17  ;;  %v1439_v63 = vadd.f32 %v1438_v32, %v4176_v44  ;;  %v4267_v44 = vadd.f32 %v2826_v3, %v3910_v27 }
 0x2c1   : > { %v2842_v25 = vpop.eup %2841  ;;  %2853 = vtanh.f32 %v1330_v20  ;;  %1631 = vmatpush.msrb.mxu0 %v4235_v52  ;;  %v4259_v37 = vadd.f32 %v2840_v22, %v3898_v46  ;;  %v1389_v33 = vadd.f32 %v4202_v19, %v4182_v30  ;;  %v1386_v19 = vadd.f32 %v4186_v48, %v4168_v15 }
 0x2c2   : > { %v2844_v57 = vpop.eup %2843  ;;  %2855 = vtanh.f32 %v1280_v45  ;;  %1678 = vmatpush.msrb.mxu1 %v4241_v40  ;;  %v4263_v47 = vadd.f32 %v2842_v25, %v3904_v50  ;;  %v1436_v45 = vadd.f32 %v4204_v12, %v4182_v30  ;;  %v1433_v30 = vadd.f32 %v4188_v7, %v4168_v15 }
 0x2c3   : > { %v4254_v55 = vpop.eup %2845  ;;  %2857 = vtanh.f32 %v1327_v9  ;;  %1632 = vmatpush.msrb.mxu0 %v4247_v42  ;;  %v4270_v20 = vadd.f32 %v2844_v57, %v3916_v36  ;;  %v1383_v48 = vadd.f32 %v4178_v18, %v4190_v60  ;;  %v1430_v7 = vadd.f32 %v4180_v23, %v4190_v60  ;;  %v5098_v57 = vld [vmem:[#allocation22_spill] sm:$0xff] }
 0x2c4   : > { %v2848_v58 = vpop.eup %2847  ;;  %2859 = vtanh.f32 %v1277_v2  ;;  %1679 = vmatpush.msrb.mxu1 %v4252_v11  ;;  %v1380_v18 = vadd.f32 %v4170_v1, %v4196_v56  ;;  %v1427_v23 = vadd.f32 %v4172_v24, %v4196_v56  ;;  %v1377_v1 = vadd.f32 %v4164_v5, %v4174_v29 }
 0x2c5   : > { %v2850_v4 = vpop.eup %2849  ;;  %2861 = vtanh.f32 %v1324_v13  ;;  %v1394_v17 = vpop.f32.mrf.mxu2  ;;  %1633 = vmatpush.msrb.mxu0 %v4259_v37  ;;  %v4281_v27 = vadd.f32 %v2848_v58, %v3922_v41  ;;  %v1424_v24 = vadd.f32 %v4166_v6, %v4174_v29  ;;  %v1374_v2 = vadd.f32 %v4158_v39, %v4215_v51  ;;  %v5095_v6 = vld [vmem:[#allocation36_spill] sm:$0xff] }
 0x2c6   : > { %v1441_v54 = vpop.f32.mrf.mxu3  ;;  %v2852_v46 = vpop.eup %2851  ;;  %2863 = vtanh.f32 %v1392_v0  ;;  %v1395_v50 = vadd.f32 %v1394_v17, %v4162_v59  ;;  %1680 = vmatpush.msrb.mxu1 %v4263_v47  ;;  %v1371_v0 = vadd.f32 %v5098_v57, %v4229_v49  ;;  %v5101_v58 = vld [vmem:[#allocation12_spill] sm:$0xff]  ;;  %v5103_v17 = vld [vmem:[#allocation23_spill] sm:$0xff]  ;;  %v5124_v57 = vld [vmem:[#allocation34_spill] sm:$0xff] }
 0x2c7   : > { %v1442_v32 = vadd.f32 %v1441_v54, %v4162_v59  ;;  %v2854_v61 = vpop.eup %2853  ;;  %2865 = vtanh.f32 %v1439_v63  ;;  %1634 = vmatpush.msrb.mxu0 %v4267_v44  ;;  %v4287_v59 = vadd.f32 %v2850_v4, %v3928_v43  ;;  %v4293_v41 = vadd.f32 %v2852_v46, %v3935_v26 }
 0x2c8   : > { %v2856_v36 = vpop.eup %2855  ;;  %2867 = vtanh.f32 %v1395_v50  ;;  %1681 = vmatpush.msrb.mxu1 %v4270_v20  ;;  %v4299_v43 = vadd.f32 %v2854_v61, %v3945_v38  ;;  %v1418_v54 = vadd.f32 %v5103_v17, %v4229_v49  ;;  %v5107_v49 = vld [vmem:[#allocation32_spill] sm:$0xff] }
 0x2c9   : > { %v2858_v3 = vpop.eup %2857  ;;  %2869 = vtanh.f32 %v1442_v32  ;;  %1635 = vmatpush.msrb.mxu0 %v4281_v27  ;;  %v4305_v26 = vadd.f32 %v2856_v36, %v3956_v35  ;;  %v5105_v32 = vld [vmem:[#allocation13_spill] sm:$0xff] }
 0x2ca   : > { %v2860_v12 = vpop.eup %2859  ;;  %2871 = vtanh.f32 %v1389_v33  ;;  %1682 = vmatpush.msrb.mxu1 %v4287_v59  ;;  %v4311_v38 = vadd.f32 %v2858_v3, %v3967_v10  ;;  %v5104_v33 = vld [vmem:[#allocation20_spill] sm:$0xff] }
 0x2cb   : > { %v2862_v14 = vpop.eup %2861  ;;  %2873 = vtanh.f32 %v1436_v45  ;;  %1636 = vmatpush.msrb.mxu0 %v4293_v41  ;;  %v4317_v35 = vadd.f32 %v2860_v12, %v3978_v34  ;;  %v4330_v34 = vadd.f32 %v4208_v8, %v4000_v16  ;;  %v4348_v16 = vld [vmem:[%s4935_s7] sm:$0xff]  ;;  %v5097_v8 = vld [vmem:[#allocation24_spill] sm:$0xff]  ;;  %v1368_v50 = vadd.f32 %v5104_v33, %v4184_v28  ;;  %v5110_v12 = vld [vmem:[#allocation10_spill] sm:$0xff] }
 0x2cc   : > { %v2864_v15 = vpop.eup %2863  ;;  %2875 = vtanh.f32 %v1386_v19  ;;  %1683 = vmatpush.msrb.mxu1 %v4299_v43  ;;  %v4323_v10 = vadd.f32 %v2862_v14, %v3989_v31  ;;  %v5094_v31 = vld [vmem:[#allocation14_spill] sm:$0xff]  ;;  %v1421_v13 = vadd.f32 %v5097_v8, %v4215_v51  ;;  %v5109_v19 = vld [vmem:[#allocation21_spill] sm:$0xff] }
 0x2cd   : > { %v2866_v9 = vpop.eup %2865  ;;  %2877 = vtanh.f32 %v1433_v30  ;;  %1637 = vmatpush.msrb.mxu0 %v4305_v26  ;;  %v4340_v29 = vadd.f32 %v4254_v55, %v5094_v31  ;;  %v5099_v55 = vld [vmem:[#allocation37_spill] sm:$0xff]  ;;  %v1415_v3 = vadd.f32 %v5109_v19, %v4184_v28  ;;  %v5114_v28 = vld [vmem:[#allocation30_spill] sm:$0xff]  ;;  %v5120_v31 = vld [vmem:[#allocation31_spill] sm:$0xff] }
 0x2ce   : > { %v2868_v60 = vpop.eup %2867  ;;  %2879 = vtanh.f32 %v1383_v48  ;;  %1684 = vmatpush.msrb.mxu1 %v4311_v38  ;;  %v4359_v63 = vadd.f32 %v2864_v15, %v5099_v55  ;;  %v4362_v4 = vadd.f32 %v2866_v9, %v5101_v58  ;;  %v5112_v14 = vld [vmem:[#allocation33_spill] sm:$0xff] }
 0x2cf   : > { %v2870_v22 = vpop.eup %2869  ;;  %2881 = vtanh.f32 %v1430_v7  ;;  %1638 = vmatpush.msrb.mxu0 %v4317_v35  ;;  %v4333_v56 = vadd.f32 %v2868_v60, %v3938_v21  ;;  %v1526_v19 = vld [vmem:[%s4935_s7 + $0x10] sm:$0xff] }
 0x2d0   : > { %v2872_v5 = vpop.eup %2871  ;;  %2883 = vtanh.f32 %v1380_v18  ;;  %1685 = vmatpush.msrb.mxu1 %v4323_v10  ;;  %v4343_v25 = vadd.f32 %v2870_v22, %v5095_v6  ;;  %5100 = vst [vmem:[#allocation26_spill] sm:$0xff] %v4359_v63 }
 0x2d1   : > { %v2874_v21 = vpop.eup %2873  ;;  %2885 = vtanh.f32 %v1427_v23  ;;  %1639 = vmatpush.msrb.mxu0 %v4330_v34  ;;  %1724 = vmatpush.msrb.mxu2 %v4333_v56  ;;  %5102 = vst [vmem:[#allocation27_spill] sm:$0xff] %v4362_v4  ;;  %v4375_v61 = vadd.f32 %v2872_v5, %v5105_v32  ;;  %v5116_v23 = vld [vmem:[#allocation11_spill] sm:$0xff] }
 0x2d2   : > { %5096 = vst [vmem:[#allocation25_spill] sm:$0xff] %v4343_v25  ;;  %v2876_v39 = vpop.eup %2875  ;;  %2887 = vtanh.f32 %v1377_v1  ;;  %1686 = vmatpush.msrb.mxu1 %v4340_v29  ;;  %1771 = vmatpush.msrb.mxu3 %v4343_v25  ;;  %v4378_v45 = vadd.f32 %v2874_v21, %v5107_v49  ;;  %v1525_v1 = vld [vmem:[%s4935_s7 + $0x8] sm:$0xff]  ;;  %v5118_v5 = vld [vmem:[#allocation15_spill] sm:$0xff]  ;;  %v5132_v49 = vld [vmem:[#allocation17_spill] sm:$0xff] }
 0x2d3   : > { %v2878_v51 = vpop.eup %2877  ;;  %2889 = vtanh.f32 %v1424_v24  ;;  %2530 = vmatmul.msk.f32.vlgmr.msrb.gmra.mxu0 %vm857_vm2, %v4348_v16  ;;  %2540 = vmatmul.msk.f32.vlgmr.msrb.gmra.mxu1 %vm857_vm2, %v4348_v16  ;;  %5106 = vst [vmem:[#allocation28_spill] sm:$0xff] %v4375_v61  ;;  %v4385_v48 = vadd.f32 %v2876_v39, %v5110_v12  ;;  %v5136_v12 = vld [vmem:[#allocation19_spill] sm:$0xff] }
 0x2d4   : > { %v2880_v46 = vpop.eup %2879  ;;  %2891 = vtanh.f32 %v1374_v2  ;;  %1725 = vmatpush.msrb.mxu2 %v4359_v63  ;;  %1772 = vmatpush.msrb.mxu3 %v4362_v4  ;;  %5108 = vst [vmem:[#allocation29_spill] sm:$0xff] %v4378_v45  ;;  %v4388_v7 = vadd.f32 %v2878_v51, %v5112_v14  ;;  %v5126_v51 = vld [vmem:[#allocation16_spill] sm:$0xff] }
 0x2d5   : > { %v2882_v36 = vpop.eup %2881  ;;  %2893 = vtanh.f32 %v1421_v13  ;;  %5111 = vst [vmem:[#allocation14_spill] sm:$0xff] %v4385_v48  ;;  %v4393_v9 = vadd.f32 %v2880_v46, %v5114_v28  ;;  %v5122_v13 = vld [vmem:[#allocation8_spill] sm:$0xff]  ;;  %v1530_v28 = vld [vmem:[%s4935_s7 + $0x30] sm:$0xff] }
 0x2d6   : > { %v2884_v30 = vpop.eup %2883  ;;  %2895 = vtanh.f32 %v1371_v0  ;;  %1726 = vmatpush.msrb.mxu2 %v4375_v61  ;;  %1773 = vmatpush.msrb.mxu3 %v4378_v45  ;;  %5113 = vst [vmem:[#allocation36_spill] sm:$0xff] %v4388_v7  ;;  %v4396_v60 = vadd.f32 %v2882_v36, %v5116_v23  ;;  %v1531_v23 = vld [vmem:[%s4935_s7 + $0x38] sm:$0xff] }
 0x2d7   : > { %v2886_v15 = vpop.eup %2885  ;;  %2897 = vtanh.f32 %v1418_v54  ;;  %5115 = vst [vmem:[#allocation24_spill] sm:$0xff] %v4393_v9  ;;  %v4404_v2 = vadd.f32 %v2884_v30, %v5118_v5  ;;  %v5128_v54 = vld [vmem:[#allocation9_spill] sm:$0xff] }
 0x2d8   : > { %v2888_v18 = vpop.eup %2887  ;;  %2899 = vtanh.f32 %v1368_v50  ;;  %1727 = vmatpush.msrb.mxu2 %v4385_v48  ;;  %1774 = vmatpush.msrb.mxu3 %v4388_v7  ;;  %5117 = vst [vmem:[#allocation22_spill] sm:$0xff] %v4396_v60  ;;  %v4407_v6 = vadd.f32 %v2886_v15, %v5120_v31  ;;  %v5130_v50 = vld [vmem:[#allocation35_spill] sm:$0xff]  ;;  %v1527_v15 = vld [vmem:[%s4935_s7 + $0x18] sm:$0xff] }
 0x2d9   : > { %v2890_v22 = vpop.eup %2889  ;;  %2901 = vtanh.f32 %v1415_v3  ;;  %5119 = vst [vmem:[#allocation37_spill] sm:$0xff] %v4404_v2  ;;  %v4414_v39 = vadd.f32 %v2888_v18, %v5122_v13  ;;  %v5134_v3 = vld [vmem:[#allocation18_spill] sm:$0xff]  ;;  %v1528_v18 = vld [vmem:[%s4935_s7 + $0x20] sm:$0xff] }
 0x2da   : > { %v2892_v24 = vpop.eup %2891  ;;  %1728 = vmatpush.msrb.mxu2 %v4393_v9  ;;  %1775 = vmatpush.msrb.mxu3 %v4396_v60  ;;  %5121 = vst [vmem:[#allocation12_spill] sm:$0xff] %v4407_v6  ;;  %v4417_v0 = vadd.f32 %v2890_v22, %v5124_v57  ;;  %v1533_v22 = vld [vmem:[%s4935_s7 + $0x48] sm:$0xff] }
 0x2db   : > { %v2894_v21 = vpop.eup %2893  ;;  %2531 = vmatmul.msk.f32.gmra.mxu0 %vm857_vm2, %v1525_v1  ;;  %2541 = vmatmul.msk.f32.gmra.mxu1 %vm857_vm2, %v1525_v1  ;;  %5123 = vst [vmem:[#allocation23_spill] sm:$0xff] %v4414_v39  ;;  %v4422_v17 = vadd.f32 %v2892_v24, %v5126_v51 }
 0x2dc   : > { %v2896_v8 = vpop.eup %2895  ;;  %1729 = vmatpush.msrb.mxu2 %v4404_v2  ;;  %1776 = vmatpush.msrb.mxu3 %v4407_v6  ;;  %5125 = vst [vmem:[#allocation20_spill] sm:$0xff] %v4417_v0  ;;  %v4425_v46 = vadd.f32 %v2894_v21, %v5128_v54 }
 0x2dd   : > { %v2898_v55 = vpop.eup %2897  ;;  %5127 = vst [vmem:[#allocation13_spill] sm:$0xff] %v4422_v17  ;;  %v4430_v32 = vadd.f32 %v2896_v8, %v5130_v50 }
 0x2de   : > { %v2900_v58 = vpop.eup %2899  ;;  %1730 = vmatpush.msrb.mxu2 %v4414_v39  ;;  %1777 = vmatpush.msrb.mxu3 %v4417_v0  ;;  %5129 = vst [vmem:[#allocation32_spill] sm:$0xff] %v4425_v46  ;;  %v4433_v36 = vadd.f32 %v2898_v55, %v5132_v49 }
 0x2df   : > { %v2902_v33 = vpop.eup %2901  ;;  %5131 = vst [vmem:[#allocation21_spill] sm:$0xff] %v4430_v32  ;;  %v4441_v30 = vadd.f32 %v2900_v58, %v5134_v3 }
 0x2e0   : > { %1731 = vmatpush.msrb.mxu2 %v4422_v17  ;;  %1778 = vmatpush.msrb.mxu3 %v4425_v46  ;;  %5133 = vst [vmem:[#allocation10_spill] sm:$0xff] %v4433_v36  ;;  %v4444_v14 = vadd.f32 %v2902_v33, %v5136_v12  ;;  %v4545_v17 = vpop.permute.xlu1 %1586 }
 0x2e1   : > { %5135 = vst [vmem:[#allocation33_spill] sm:$0xff] %v4441_v30 }
 0x2e2   : > { %1732 = vmatpush.msrb.mxu2 %v4430_v32  ;;  %1779 = vmatpush.msrb.mxu3 %v4433_v36  ;;  %5137 = vst [vmem:[#allocation30_spill] sm:$0xff] %v4444_v14 }
 0x2e3   : > { %2532 = vmatmul.msk.f32.gmra.mxu0 %vm857_vm2, %v1526_v19  ;;  %2542 = vmatmul.msk.f32.gmra.mxu1 %vm857_vm2, %v1526_v19 }
 0x2e4   : > { %1733 = vmatpush.msrb.mxu2 %v4441_v30  ;;  %1780 = vmatpush.msrb.mxu3 %v4444_v14  ;;  %v4539_v14 = vpop.permute.xlu0 %1591 }
 0x2e5   : > { %2550 = vmatmul.msk.f32.vlgmr.msrb.gmra.mxu2 %vm857_vm2, %v4348_v16  ;;  %2560 = vmatmul.msk.f32.vlgmr.msrb.gmra.mxu3 %vm857_vm2, %v4348_v16  ;;  %v1529_v16 = vld [vmem:[%s4935_s7 + $0x28] sm:$0xff] }
 0x2e8   : > { %v4558_v45 = vpop.permute.xlu1 %1571 }
 0x2eb   : > { %2533 = vmatmul.msk.f32.gmra.mxu0 %vm857_vm2, %v1527_v15  ;;  %2543 = vmatmul.msk.f32.gmra.mxu1 %vm857_vm2, %v1527_v15 }
 0x2ec   : > { %v4551_v60 = vpop.permute.xlu0 %1576 }
 0x2ed   : > { %2551 = vmatmul.msk.f32.gmra.mxu2 %vm857_vm2, %v1525_v1  ;;  %2561 = vmatmul.msk.f32.gmra.mxu3 %vm857_vm2, %v1525_v1  ;;  %v1532_v1 = vld [vmem:[%s4935_s7 + $0x40] sm:$0xff] }
 0x2f0   : > { %v4583_v25 = vpop.permute.xlu1 %1556 }
 0x2f3   : > { %2534 = vmatmul.msk.f32.gmra.mxu0 %vm857_vm2, %v1528_v18  ;;  %2544 = vmatmul.msk.f32.gmra.mxu1 %vm857_vm2, %v1528_v18 }
 0x2f5   : > { %2552 = vmatmul.msk.f32.gmra.mxu2 %vm857_vm2, %v1526_v19  ;;  %2562 = vmatmul.msk.f32.gmra.mxu3 %vm857_vm2, %v1526_v19 }
 0x2fb   : > { %2535 = vmatmul.msk.f32.gmra.mxu0 %vm857_vm2, %v1529_v16  ;;  %2545 = vmatmul.msk.f32.gmra.mxu1 %vm857_vm2, %v1529_v16 }
 0x2fd   : > { %2553 = vmatmul.msk.f32.gmra.mxu2 %vm857_vm2, %v1527_v15  ;;  %2563 = vmatmul.msk.f32.gmra.mxu3 %vm857_vm2, %v1527_v15 }
 0x303   : > { %2536 = vmatmul.msk.f32.gmra.mxu0 %vm857_vm2, %v1530_v28  ;;  %2546 = vmatmul.msk.f32.gmra.mxu1 %vm857_vm2, %v1530_v28 }
 0x305   : > { %2554 = vmatmul.msk.f32.gmra.mxu2 %vm857_vm2, %v1528_v18  ;;  %2564 = vmatmul.msk.f32.gmra.mxu3 %vm857_vm2, %v1528_v18  ;;  %v4531_v18 = vpop.permute.xlu2 %1581 }
 0x30b   : > { %2537 = vmatmul.msk.f32.gmra.mxu0 %vm857_vm2, %v1531_v23  ;;  %2547 = vmatmul.msk.f32.gmra.mxu1 %vm857_vm2, %v1531_v23 }
 0x30d   : > { %2555 = vmatmul.msk.f32.gmra.mxu2 %vm857_vm2, %v1529_v16  ;;  %2565 = vmatmul.msk.f32.gmra.mxu3 %vm857_vm2, %v1529_v16 }
 0x313   : > { %2538 = vmatmul.msk.f32.gmra.mxu0 %vm857_vm2, %v1532_v1  ;;  %2548 = vmatmul.msk.f32.gmra.mxu1 %vm857_vm2, %v1532_v1 }
 0x315   : > { %2556 = vmatmul.msk.f32.gmra.mxu2 %vm857_vm2, %v1530_v28  ;;  %2566 = vmatmul.msk.f32.gmra.mxu3 %vm857_vm2, %v1530_v28 }
 0x31b   : > { %2539 = vmatmul.msk.f32.gmra.mxu0 %vm857_vm2, %v1533_v22  ;;  %2549 = vmatmul.msk.f32.gmra.mxu1 %vm857_vm2, %v1533_v22 }
 0x31d   : > { %2557 = vmatmul.msk.f32.gmra.mxu2 %vm857_vm2, %v1531_v23  ;;  %2567 = vmatmul.msk.f32.gmra.mxu3 %vm857_vm2, %v1531_v23 }
 0x325   : > { %2558 = vmatmul.msk.f32.gmra.mxu2 %vm857_vm2, %v1532_v1  ;;  %2568 = vmatmul.msk.f32.gmra.mxu3 %vm857_vm2, %v1532_v1 }
 0x32d   : > { %2559 = vmatmul.msk.f32.gmra.mxu2 %vm857_vm2, %v1533_v22  ;;  %2569 = vmatmul.msk.f32.gmra.mxu3 %vm857_vm2, %v1533_v22  ;;  %v4537_v22 = vpop.permute.xlu2 %1566 }
 0x335   : > { %v4553_v9 = vpop.permute.xlu2 %1551 }
 0x350   : > { %v4507_v24 = vpop.f32.mrf.mxu0  ;;  %v4509_v5 = vpop.f32.mrf.mxu1 }
 0x358   : > { %v1644_v31 = vpop.f32.mrf.mxu0  ;;  %v4511_v21 = vpop.f32.mrf.mxu1 }
 0x359   : > { %v1645_v7 = vadd.f32 %v1644_v31, %v4553_v9 }
 0x35b   : > { %2903 = vtanh.f32 %v1645_v7  ;;  %v4569_v7 = vpop.permute.xlu0 %1561 }
 0x360   : > { %v4513_v8 = vpop.f32.mrf.mxu0  ;;  %v4515_v13 = vpop.f32.mrf.mxu1 }
 0x368   : > { %v1650_v57 = vpop.f32.mrf.mxu0  ;;  %v4517_v55 = vpop.f32.mrf.mxu1 }
 0x369   : > { %v4519_v58 = vpop.f32.mrf.mxu2  ;;  %v4521_v51 = vpop.f32.mrf.mxu3 }
 0x36a   : > { %5138 = vst [vmem:[#allocation11_spill] sm:$0xff] %v4519_v58 }
 0x36b   : > { %5139 = vst [vmem:[#allocation15_spill] sm:$0xff] %v4521_v51 }
 0x370   : > { %v1653_v54 = vpop.f32.mrf.mxu0  ;;  %v1700_v33 = vpop.f32.mrf.mxu1 }
 0x371   : > { %v4523_v50 = vpop.f32.mrf.mxu2  ;;  %v4525_v49 = vpop.f32.mrf.mxu3 }
 0x372   : > { %5140 = vst [vmem:[#allocation31_spill] sm:$0xff] %v4523_v50 }
 0x373   : > { %5141 = vst [vmem:[#allocation8_spill] sm:$0xff] %v4525_v49 }
 0x378   : > { %v1656_v19 = vpop.f32.mrf.mxu0  ;;  %v1703_v3 = vpop.f32.mrf.mxu1 }
 0x379   : > { %v4527_v12 = vpop.f32.mrf.mxu2  ;;  %v4529_v15 = vpop.f32.mrf.mxu3 }
 0x37a   : > { %5142 = vst [vmem:[#allocation34_spill] sm:$0xff] %v4527_v12 }
 0x37b   : > { %5143 = vst [vmem:[#allocation16_spill] sm:$0xff] %v4529_v15 }
 0x380   : > { %v1659_v16 = vpop.f32.mrf.mxu0  ;;  %v1706_v28 = vpop.f32.mrf.mxu1 }
 0x381   : > { %v4533_v23 = vpop.f32.mrf.mxu2  ;;  %v4535_v1 = vpop.f32.mrf.mxu3  ;;  %v1707_v31 = vadd.f32 %v1706_v28, %v4551_v60  ;;  %v1651_v28 = vadd.f32 %v1650_v57, %v4569_v7 }
 0x388   : > { %v1662_v30 = vpop.f32.mrf.mxu0  ;;  %v1709_v36 = vpop.f32.mrf.mxu1 }
 0x389   : > { %v4541_v32 = vpop.f32.mrf.mxu2  ;;  %v4543_v46 = vpop.f32.mrf.mxu3  ;;  %v1663_v49 = vadd.f32 %v1662_v30, %v4531_v18 }
 0x38a   : > { %v4573_v30 = vpop.eup %2903 }
 0x390   : > { %v1665_v0 = vpop.f32.mrf.mxu0  ;;  %v1712_v39 = vpop.f32.mrf.mxu1 }
 0x391   : > { %v4547_v6 = vpop.f32.mrf.mxu2  ;;  %v4549_v2 = vpop.f32.mrf.mxu3  ;;  %v1666_v48 = vadd.f32 %v1665_v0, %v4545_v17  ;;  %v1713_v51 = vadd.f32 %v1712_v39, %v4545_v17  ;;  %v1710_v0 = vadd.f32 %v1709_v36, %v4531_v18  ;;  %v1660_v39 = vadd.f32 %v1659_v16, %v4551_v60 }
 0x392   : > { %v1654_v36 = vadd.f32 %v1653_v54, %v4537_v22 }
 0x393   : > { %2905 = vtanh.f32 %v1666_v48  ;;  %v1657_v48 = vadd.f32 %v1656_v19, %v4558_v45 }
 0x394   : > { %2907 = vtanh.f32 %v1713_v51 }
 0x398   : > { %v1668_v58 = vpop.f32.mrf.mxu0  ;;  %v1715_v61 = vpop.f32.mrf.mxu1 }
 0x399   : > { %v1669_v4 = vadd.f32 %v1668_v58, %v4539_v14  ;;  %v1716_v50 = vadd.f32 %v1715_v61, %v4539_v14  ;;  %v4563_v63 = vpop.f32.mrf.mxu2  ;;  %v4565_v15 = vpop.f32.mrf.mxu3  ;;  %v1704_v61 = vadd.f32 %v1703_v3, %v4558_v45  ;;  %v1698_v3 = vadd.f32 %v4517_v55, %v4569_v7 }
 0x39a   : > { %v2906_v58 = vpop.eup %2905 }
 0x39b   : > { %2909 = vtanh.f32 %v1669_v4  ;;  %v2908_v51 = vpop.eup %2907  ;;  %v1701_v4 = vadd.f32 %v1700_v33, %v4537_v22  ;;  %v1648_v33 = vadd.f32 %v4513_v8, %v4583_v25  ;;  %v1692_v8 = vadd.f32 %v4511_v21, %v4553_v9 }
 0x39c   : > { %2911 = vtanh.f32 %v1716_v50 }
 0x39d   : > { %2913 = vtanh.f32 %v1663_v49 }
 0x39e   : > { %2915 = vtanh.f32 %v1710_v0 }
 0x39f   : > { %2917 = vtanh.f32 %v1660_v39 }
 0x3a0   : > { %2919 = vtanh.f32 %v1707_v31  ;;  %v1695_v31 = vadd.f32 %v4515_v13, %v4583_v25 }
 0x3a1   : > { %v2910_v16 = vpop.eup %2909  ;;  %2921 = vtanh.f32 %v1657_v48  ;;  %v4579_v50 = vpop.f32.mrf.mxu2  ;;  %v1884_v48 = vadd.f32 %v2906_v58, %v4235_v52 }
 0x3a2   : > { %v4581_v49 = vpop.f32.mrf.mxu3  ;;  %v2912_v19 = vpop.eup %2911  ;;  %2923 = vtanh.f32 %v1704_v61  ;;  %v1888_v54 = vadd.f32 %v2910_v16, %v4222_v62  ;;  %v1885_v62 = vadd.f32 %v2908_v51, %v4241_v40 }
 0x3a3   : > { %v2914_v0 = vpop.eup %2913  ;;  %2925 = vtanh.f32 %v1654_v36  ;;  %v1889_v57 = vadd.f32 %v2912_v19, %v4227_v53  ;;  %v4595_v61 = vpop.permute.xlu0 %1546 }
 0x3a4   : > { %v2916_v39 = vpop.eup %2915  ;;  %2927 = vtanh.f32 %v1701_v4  ;;  %1998 = vmatpush.msra.mxu0 %v1888_v54  ;;  %v1880_v53 = vadd.f32 %v2914_v0, %v4247_v42  ;;  %v1642_v36 = vadd.f32 %v4507_v24, %v4595_v61  ;;  %v1689_v40 = vadd.f32 %v4509_v5, %v4595_v61 }
 0x3a5   : > { %v2918_v12 = vpop.eup %2917  ;;  %2929 = vtanh.f32 %v1651_v28  ;;  %2045 = vmatpush.msra.mxu1 %v1889_v57  ;;  %v1881_v52 = vadd.f32 %v2916_v39, %v4252_v11 }
 0x3a6   : > { %v2920_v55 = vpop.eup %2919  ;;  %2931 = vtanh.f32 %v1698_v3  ;;  %1999 = vmatpush.msra.mxu0 %v1884_v48  ;;  %v1876_v21 = vadd.f32 %v2918_v12, %v4259_v37  ;;  %v1856_v48 = vadd.f32 %v4573_v30, %v4317_v35  ;;  %v1754_v35 = vadd.f32 %v4563_v63, %v4551_v60 }
 0x3a7   : > { %v2922_v13 = vpop.eup %2921  ;;  %2933 = vtanh.f32 %v1648_v33  ;;  %2046 = vmatpush.msra.mxu1 %v1885_v62  ;;  %v1877_v42 = vadd.f32 %v2920_v55, %v4263_v47 }
 0x3a8   : > { %v2924_v58 = vpop.eup %2923  ;;  %2935 = vtanh.f32 %v1695_v31  ;;  %2000 = vmatpush.msra.mxu0 %v1880_v53  ;;  %v1872_v24 = vadd.f32 %v2922_v13, %v4267_v44  ;;  %v5145_v13 = vld [vmem:[#allocation25_spill] sm:$0xff] }
 0x3a9   : > { %v2926_v51 = vpop.eup %2925  ;;  %v1759_v4 = vpop.f32.mrf.mxu2  ;;  %2047 = vmatpush.msra.mxu1 %v1881_v52  ;;  %2937 = vtanh.f32 %v1692_v8  ;;  %v1873_v5 = vadd.f32 %v2924_v58, %v4270_v20  ;;  %v5144_v8 = vld [vmem:[#allocation34_spill] sm:$0xff]  ;;  %v5148_v58 = vld [vmem:[#allocation31_spill] sm:$0xff] }
 0x3aa   : > { %v1806_v16 = vpop.f32.mrf.mxu3  ;;  %v2928_v28 = vpop.eup %2927  ;;  %2001 = vmatpush.msra.mxu0 %v1876_v21  ;;  %2939 = vtanh.f32 %v1642_v36  ;;  %v1868_v37 = vadd.f32 %v2926_v51, %v4281_v27  ;;  %v1760_v54 = vadd.f32 %v1759_v4, %v4545_v17  ;;  %v1742_v53 = vadd.f32 %v5144_v8, %v4583_v25  ;;  %v5146_v36 = vld [vmem:[#allocation16_spill] sm:$0xff]  ;;  %v5149_v21 = vld [vmem:[#allocation27_spill] sm:$0xff]  ;;  %v1895_v8 = vld [vmem:[%s4937_s9 + $0x18] sm:$0xff] }
 0x3ab   : > { %v2930_v11 = vpop.eup %2929  ;;  %2048 = vmatpush.msra.mxu1 %v1877_v42  ;;  %2941 = vtanh.f32 %v1689_v40  ;;  %v1869_v3 = vadd.f32 %v2928_v28, %v4287_v59  ;;  %v1807_v0 = vadd.f32 %v1806_v16, %v4545_v17  ;;  %v1789_v52 = vadd.f32 %v5146_v36, %v4583_v25  ;;  %v5150_v16 = vld [vmem:[#allocation8_spill] sm:$0xff]  ;;  %v1896_v36 = vld [vmem:[%s4937_s9 + $0x20] sm:$0xff] }
 0x3ac   : > { %v2932_v19 = vpop.eup %2931  ;;  %2002 = vmatpush.msra.mxu0 %v1872_v24  ;;  %v1864_v44 = vadd.f32 %v2930_v11, %v4293_v41  ;;  %v1757_v41 = vadd.f32 %v4579_v50, %v4531_v18  ;;  %2943 = vtanh.f32 %v1760_v54  ;;  %v4632_v50 = vld [vmem:[%s4937_s9] sm:$0xff]  ;;  %v1739_v40 = vadd.f32 %v5148_v58, %v4553_v9  ;;  %v5151_v25 = vld [vmem:[#allocation28_spill] sm:$0xff] }
 0x3ad   : > { %v2934_v12 = vpop.eup %2933  ;;  %2049 = vmatpush.msra.mxu1 %v1873_v5  ;;  %v1865_v20 = vadd.f32 %v2932_v19, %v4299_v43  ;;  %2945 = vtanh.f32 %v1807_v0  ;;  %v1786_v42 = vadd.f32 %v5150_v16, %v4553_v9  ;;  %v5152_v11 = vld [vmem:[#allocation11_spill] sm:$0xff]  ;;  %v5153_v19 = vld [vmem:[#allocation29_spill] sm:$0xff]  ;;  %v5156_v0 = vld [vmem:[#allocation36_spill] sm:$0xff] }
 0x3ae   : > { %v2936_v47 = vpop.eup %2935  ;;  %2003 = vmatpush.msra.mxu0 %v1868_v37  ;;  %v1860_v57 = vadd.f32 %v2934_v12, %v4305_v26  ;;  %v1804_v26 = vadd.f32 %v4581_v49, %v4531_v18  ;;  %v1792_v49 = vadd.f32 %v4535_v1, %v4569_v7  ;;  %v5147_v1 = vld [vmem:[#allocation26_spill] sm:$0xff]  ;;  %v1736_v5 = vadd.f32 %v5152_v11, %v4595_v61  ;;  %v5154_v9 = vld [vmem:[#allocation15_spill] sm:$0xff] }
 0x3af   : > { %2050 = vmatpush.msra.mxu1 %v1869_v3  ;;  %v2938_v33 = vpop.eup %2937  ;;  %v1861_v59 = vadd.f32 %v2936_v47, %v4311_v38  ;;  %v1783_v3 = vadd.f32 %v5154_v9, %v4595_v61  ;;  %v5155_v47 = vld [vmem:[#allocation14_spill] sm:$0xff]  ;;  %v1894_v61 = vld [vmem:[%s4937_s9 + $0x10] sm:$0xff] }
 0x3b0   : > { %2004 = vmatpush.msra.mxu0 %v1864_v44  ;;  %v2940_v27 = vpop.eup %2939  ;;  %v1857_v38 = vadd.f32 %v2938_v33, %v4323_v10  ;;  %v1751_v10 = vadd.f32 %v4547_v6, %v4558_v45  ;;  %v1795_v6 = vadd.f32 %v4543_v46, %v4537_v22 }
 0x3b1   : > { %v1762_v39 = vpop.f32.mrf.mxu2  ;;  %2051 = vmatpush.msra.mxu1 %v1865_v20  ;;  %v2942_v62 = vpop.eup %2941  ;;  %v1852_v30 = vadd.f32 %v2940_v27, %v4330_v34  ;;  %v1798_v34 = vadd.f32 %v4549_v2, %v4558_v45  ;;  %v1745_v45 = vadd.f32 %v4533_v23, %v4569_v7 }
 0x3b2   : > { %v1809_v31 = vpop.f32.mrf.mxu3  ;;  %v1763_v43 = vadd.f32 %v1762_v39, %v4539_v14  ;;  %2005 = vmatpush.msra.mxu0 %v1860_v57  ;;  %v1853_v18 = vadd.f32 %v2942_v62, %v4340_v29  ;;  %v2944_v63 = vpop.eup %2943  ;;  %v5157_v57 = vld [vmem:[#allocation24_spill] sm:$0xff]  ;;  %v5159_v62 = vld [vmem:[#allocation37_spill] sm:$0xff] }
 0x3b3   : > { %v1810_v17 = vadd.f32 %v1809_v31, %v4539_v14  ;;  %2052 = vmatpush.msra.mxu1 %v1861_v59  ;;  %v1801_v14 = vadd.f32 %v4565_v15, %v4551_v60  ;;  %v1748_v60 = vadd.f32 %v4541_v32, %v4537_v22  ;;  %v2946_v29 = vpop.eup %2945  ;;  %v4660_v22 = vld [vmem:[%s4937_s9 + $0x8] sm:$0xff]  ;;  %v5158_v31 = vld [vmem:[#allocation22_spill] sm:$0xff] }
 0x3b4   : > { %2947 = vtanh.f32 %v1763_v43  ;;  %2006 = vmatpush.msra.mxu0 %v1856_v48  ;;  %v1887_v51 = vadd.f32 %v2946_v29, %v5149_v21 }
 0x3b5   : > { %2949 = vtanh.f32 %v1810_v17  ;;  %2053 = vmatpush.msra.mxu1 %v1857_v38  ;;  %v5160_v17 = vld [vmem:[#allocation12_spill] sm:$0xff] }
 0x3b6   : > { %2951 = vtanh.f32 %v1757_v41  ;;  %2007 = vmatpush.msra.mxu0 %v1852_v30 }
 0x3b7   : > { %2953 = vtanh.f32 %v1804_v26  ;;  %2054 = vmatpush.msra.mxu1 %v1853_v18  ;;  %2570 = vmatmul.msk.f32.vlgmr.msra.gmra.mxu0 %vm857_vm2, %v4632_v50  ;;  %v5162_v18 = vld [vmem:[#allocation20_spill] sm:$0xff] }
 0x3b8   : > { %2955 = vtanh.f32 %v1754_v35  ;;  %2580 = vmatmul.msk.f32.vlgmr.msra.gmra.mxu1 %vm857_vm2, %v4632_v50  ;;  %v5161_v35 = vld [vmem:[#allocation23_spill] sm:$0xff] }
 0x3b9   : > { %2957 = vtanh.f32 %v1801_v14 }
 0x3ba   : > { %v2948_v15 = vpop.eup %2947  ;;  %2959 = vtanh.f32 %v1751_v10 }
 0x3bb   : > { %v2950_v2 = vpop.eup %2949  ;;  %2961 = vtanh.f32 %v1798_v34  ;;  %v1890_v32 = vadd.f32 %v2948_v15, %v4333_v56  ;;  %v1886_v56 = vadd.f32 %v2944_v63, %v5147_v1  ;;  %v5163_v63 = vld [vmem:[#allocation13_spill] sm:$0xff]  ;;  %v1900_v1 = vld [vmem:[%s4937_s9 + $0x40] sm:$0xff] }
 0x3bc   : > { %v2952_v55 = vpop.eup %2951  ;;  %2963 = vtanh.f32 %v1748_v60  ;;  %v1891_v46 = vadd.f32 %v2950_v2, %v5145_v13  ;;  %v5165_v2 = vld [vmem:[#allocation21_spill] sm:$0xff] }
 0x3bd   : > { %v2954_v23 = vpop.eup %2953  ;;  %2965 = vtanh.f32 %v1795_v6  ;;  %2092 = vmatpush.msra.mxu2 %v1890_v32  ;;  %v1882_v28 = vadd.f32 %v2952_v55, %v5151_v25  ;;  %v5164_v6 = vld [vmem:[#allocation32_spill] sm:$0xff]  ;;  %v5166_v32 = vld [vmem:[#allocation10_spill] sm:$0xff] }
 0x3be   : > { %v2956_v7 = vpop.eup %2955  ;;  %2967 = vtanh.f32 %v1745_v45  ;;  %2139 = vmatpush.msra.mxu3 %v1891_v46  ;;  %v1883_v37 = vadd.f32 %v2954_v23, %v5153_v19  ;;  %v5168_v46 = vld [vmem:[#allocation30_spill] sm:$0xff] }
 0x3bf   : > { %v2958_v4 = vpop.eup %2957  ;;  %2969 = vtanh.f32 %v1792_v49  ;;  %2093 = vmatpush.msra.mxu2 %v1886_v56  ;;  %2571 = vmatmul.msk.f32.gmra.mxu0 %vm857_vm2, %v4660_v22  ;;  %v1878_v54 = vadd.f32 %v2956_v7, %v5155_v47  ;;  %v1901_v56 = vld [vmem:[%s4937_s9 + $0x48] sm:$0xff] }
 0x3c0   : > { %v2960_v24 = vpop.eup %2959  ;;  %2971 = vtanh.f32 %v1742_v53  ;;  %2140 = vmatpush.msra.mxu3 %v1887_v51  ;;  %2581 = vmatmul.msk.f32.gmra.mxu1 %vm857_vm2, %v4660_v22  ;;  %v1879_v20 = vadd.f32 %v2958_v4, %v5156_v0  ;;  %v5167_v53 = vld [vmem:[#allocation33_spill] sm:$0xff] }
 0x3c1   : > { %v2962_v12 = vpop.eup %2961  ;;  %2973 = vtanh.f32 %v1789_v52  ;;  %2094 = vmatpush.msra.mxu2 %v1882_v28  ;;  %v1874_v27 = vadd.f32 %v2960_v24, %v5157_v57  ;;  %v1897_v52 = vld [vmem:[%s4937_s9 + $0x28] sm:$0xff]  ;;  %v4788_v57 = vpop.permute.xlu1 %1959 }
 0x3c2   : > { %v2964_v44 = vpop.eup %2963  ;;  %2975 = vtanh.f32 %v1739_v40  ;;  %2141 = vmatpush.msra.mxu3 %v1883_v37  ;;  %v1875_v59 = vadd.f32 %v2962_v12, %v5158_v31 }
 0x3c3   : > { %v2966_v33 = vpop.eup %2965  ;;  %2977 = vtanh.f32 %v1786_v42  ;;  %2095 = vmatpush.msra.mxu2 %v1878_v54  ;;  %v1870_v41 = vadd.f32 %v2964_v44, %v5159_v62 }
 0x3c4   : > { %v2968_v39 = vpop.eup %2967  ;;  %2979 = vtanh.f32 %v1736_v5  ;;  %2142 = vmatpush.msra.mxu3 %v1879_v20  ;;  %v1871_v26 = vadd.f32 %v2966_v33, %v5160_v17 }
 0x3c5   : > { %v2970_v48 = vpop.eup %2969  ;;  %2981 = vtanh.f32 %v1783_v3  ;;  %2096 = vmatpush.msra.mxu2 %v1874_v27  ;;  %v1866_v30 = vadd.f32 %v2968_v39, %v5161_v35 }
 0x3c6   : > { %v2972_v43 = vpop.eup %2971  ;;  %2143 = vmatpush.msra.mxu3 %v1875_v59  ;;  %v1867_v10 = vadd.f32 %v2970_v48, %v5162_v18  ;;  %v4796_v48 = vpop.permute.xlu0 %1949 }
 0x3c7   : > { %v2974_v38 = vpop.eup %2973  ;;  %2097 = vmatpush.msra.mxu2 %v1870_v41  ;;  %2572 = vmatmul.msk.f32.gmra.mxu0 %vm857_vm2, %v1894_v61  ;;  %v1862_v60 = vadd.f32 %v2972_v43, %v5163_v63 }
 0x3c8   : > { %v2976_v14 = vpop.eup %2975  ;;  %2144 = vmatpush.msra.mxu3 %v1871_v26  ;;  %2582 = vmatmul.msk.f32.gmra.mxu1 %vm857_vm2, %v1894_v61  ;;  %v1863_v15 = vadd.f32 %v2974_v38, %v5164_v6 }
 0x3c9   : > { %v2978_v34 = vpop.eup %2977  ;;  %2098 = vmatpush.msra.mxu2 %v1866_v30  ;;  %v1858_v49 = vadd.f32 %v2976_v14, %v5165_v2  ;;  %v4798_v62 = vpop.permute.xlu1 %1944 }
 0x3ca   : > { %v2980_v29 = vpop.eup %2979  ;;  %2145 = vmatpush.msra.mxu3 %v1867_v10  ;;  %v1859_v55 = vadd.f32 %v2978_v34, %v5166_v32 }
 0x3cb   : > { %v2982_v45 = vpop.eup %2981  ;;  %2099 = vmatpush.msra.mxu2 %v1862_v60  ;;  %v1854_v13 = vadd.f32 %v2980_v29, %v5167_v53 }
 0x3cc   : > { %2146 = vmatpush.msra.mxu3 %v1863_v15  ;;  %v1855_v23 = vadd.f32 %v2982_v45, %v5168_v46 }
 0x3cd   : > { %2100 = vmatpush.msra.mxu2 %v1858_v49 }
 0x3ce   : > { %2147 = vmatpush.msra.mxu3 %v1859_v55  ;;  %v4810_v10 = vpop.permute.xlu0 %1934 }
 0x3cf   : > { %2101 = vmatpush.msra.mxu2 %v1854_v13  ;;  %2573 = vmatmul.msk.f32.gmra.mxu0 %vm857_vm2, %v1895_v8 }
 0x3d0   : > { %2148 = vmatpush.msra.mxu3 %v1855_v23  ;;  %2583 = vmatmul.msk.f32.gmra.mxu1 %vm857_vm2, %v1895_v8 }
 0x3d1   : > { %2590 = vmatmul.msk.f32.vlgmr.msra.gmra.mxu2 %vm857_vm2, %v4632_v50  ;;  %2600 = vmatmul.msk.f32.vlgmr.msra.gmra.mxu3 %vm857_vm2, %v4632_v50  ;;  %v1898_v50 = vld [vmem:[%s4937_s9 + $0x30] sm:$0xff]  ;;  %v4814_v60 = vpop.permute.xlu1 %1929 }
 0x3d7   : > { %2574 = vmatmul.msk.f32.gmra.mxu0 %vm857_vm2, %v1896_v36 }
 0x3d8   : > { %2584 = vmatmul.msk.f32.gmra.mxu1 %vm857_vm2, %v1896_v36 }
 0x3d9   : > { %2591 = vmatmul.msk.f32.gmra.mxu2 %vm857_vm2, %v4660_v22  ;;  %2601 = vmatmul.msk.f32.gmra.mxu3 %vm857_vm2, %v4660_v22  ;;  %v1899_v22 = vld [vmem:[%s4937_s9 + $0x38] sm:$0xff] }
 0x3df   : > { %2575 = vmatmul.msk.f32.gmra.mxu0 %vm857_vm2, %v1897_v52 }
 0x3e0   : > { %2585 = vmatmul.msk.f32.gmra.mxu1 %vm857_vm2, %v1897_v52 }
 0x3e1   : > { %2592 = vmatmul.msk.f32.gmra.mxu2 %vm857_vm2, %v1894_v61  ;;  %2602 = vmatmul.msk.f32.gmra.mxu3 %vm857_vm2, %v1894_v61  ;;  %v4794_v61 = vpop.permute.xlu2 %1954 }
 0x3e7   : > { %2576 = vmatmul.msk.f32.gmra.mxu0 %vm857_vm2, %v1898_v50 }
 0x3e8   : > { %2586 = vmatmul.msk.f32.gmra.mxu1 %vm857_vm2, %v1898_v50 }
 0x3e9   : > { %2593 = vmatmul.msk.f32.gmra.mxu2 %vm857_vm2, %v1895_v8  ;;  %2603 = vmatmul.msk.f32.gmra.mxu3 %vm857_vm2, %v1895_v8  ;;  %v4807_v14 = vpop.permute.xlu2 %1939 }
 0x3ef   : > { %2577 = vmatmul.msk.f32.gmra.mxu0 %vm857_vm2, %v1899_v22 }
 0x3f0   : > { %2587 = vmatmul.msk.f32.gmra.mxu1 %vm857_vm2, %v1899_v22 }
 0x3f1   : > { %2594 = vmatmul.msk.f32.gmra.mxu2 %vm857_vm2, %v1896_v36  ;;  %2604 = vmatmul.msk.f32.gmra.mxu3 %vm857_vm2, %v1896_v36  ;;  %v4827_v36 = vpop.permute.xlu2 %1924 }
 0x3f7   : > { %2578 = vmatmul.msk.f32.gmra.mxu0 %vm857_vm2, %v1900_v1 }
 0x3f8   : > { %2588 = vmatmul.msk.f32.gmra.mxu1 %vm857_vm2, %v1900_v1 }
 0x3f9   : > { %2595 = vmatmul.msk.f32.gmra.mxu2 %vm857_vm2, %v1897_v52  ;;  %2605 = vmatmul.msk.f32.gmra.mxu3 %vm857_vm2, %v1897_v52 }
 0x3ff   : > { %2579 = vmatmul.msk.f32.gmra.mxu0 %vm857_vm2, %v1901_v56 }
 0x400   : > { %2589 = vmatmul.msk.f32.gmra.mxu1 %vm857_vm2, %v1901_v56 }
 0x401   : > { %2596 = vmatmul.msk.f32.gmra.mxu2 %vm857_vm2, %v1898_v50  ;;  %2606 = vmatmul.msk.f32.gmra.mxu3 %vm857_vm2, %v1898_v50 }
 0x409   : > { %2597 = vmatmul.msk.f32.gmra.mxu2 %vm857_vm2, %v1899_v22  ;;  %2607 = vmatmul.msk.f32.gmra.mxu3 %vm857_vm2, %v1899_v22  ;;  %v4831_v22 = vpop.permute.xlu0 %1919 }
 0x411   : > { %2598 = vmatmul.msk.f32.gmra.mxu2 %vm857_vm2, %v1900_v1  ;;  %2608 = vmatmul.msk.f32.gmra.mxu3 %vm857_vm2, %v1900_v1 }
 0x419   : > { %2599 = vmatmul.msk.f32.gmra.mxu2 %vm857_vm2, %v1901_v56  ;;  %2609 = vmatmul.msk.f32.gmra.mxu3 %vm857_vm2, %v1901_v56 }
 0x434   : > { %v4758_v7 = vpop.f32.mrf.mxu0 }
 0x435   : > { %v4760_v58 = vpop.f32.mrf.mxu1 }
 0x43c   : > { %v4762_v40 = vpop.f32.mrf.mxu0 }
 0x43d   : > { %v4764_v21 = vpop.f32.mrf.mxu1 }
 0x444   : > { %v4766_v51 = vpop.f32.mrf.mxu0 }
 0x445   : > { %v4768_v4 = vpop.f32.mrf.mxu1  ;;  %v2016_v1 = vadd.f32 %v4766_v51, %v4827_v36  ;;  %v2060_v51 = vadd.f32 %v4764_v21, %v4831_v22 }
 0x44c   : > { %v2018_v16 = vpop.f32.mrf.mxu0 }
 0x44d   : > { %v4770_v42 = vpop.f32.mrf.mxu1  ;;  %v2019_v46 = vadd.f32 %v2018_v16, %v4814_v60  ;;  %v2063_v16 = vadd.f32 %v4768_v4, %v4827_v36 }
 0x44e   : > { %v2066_v52 = vadd.f32 %v4770_v42, %v4814_v60  ;;  %v2013_v42 = vadd.f32 %v4762_v40, %v4831_v22 }
 0x454   : > { %v4772_v25 = vpop.f32.mrf.mxu2  ;;  %v4774_v28 = vpop.f32.mrf.mxu3 }
 0x455   : > { %v2021_v24 = vpop.f32.mrf.mxu0  ;;  %v2068_v11 = vpop.f32.mrf.mxu1 }
 0x456   : > { %v2022_v55 = vadd.f32 %v2021_v24, %v4810_v10  ;;  %v2069_v53 = vadd.f32 %v2068_v11, %v4810_v10 }
 0x45c   : > { %v4776_v5 = vpop.f32.mrf.mxu2  ;;  %v4778_v19 = vpop.f32.mrf.mxu3 }
 0x45d   : > { %v2024_v37 = vpop.f32.mrf.mxu0  ;;  %v2071_v12 = vpop.f32.mrf.mxu1 }
 0x45e   : > { %v2025_v2 = vadd.f32 %v2024_v37, %v4807_v14  ;;  %v2072_v49 = vadd.f32 %v2071_v12, %v4807_v14 }
 0x464   : > { %v4780_v9 = vpop.f32.mrf.mxu2  ;;  %v4782_v3 = vpop.f32.mrf.mxu3 }
 0x465   : > { %v2027_v47 = vpop.f32.mrf.mxu0  ;;  %v2074_v54 = vpop.f32.mrf.mxu1 }
 0x466   : > { %v2028_v29 = vadd.f32 %v2027_v47, %v4798_v62  ;;  %v2075_v6 = vadd.f32 %v2074_v54, %v4798_v62  ;;  %v4839_v47 = vpop.permute.xlu1 %1914 }
 0x467   : > { %v2010_v4 = vadd.f32 %v4758_v7, %v4839_v47  ;;  %v2057_v40 = vadd.f32 %v4760_v58, %v4839_v47 }
 0x46c   : > { %v4784_v44 = vpop.f32.mrf.mxu2  ;;  %v4786_v0 = vpop.f32.mrf.mxu3 }
 0x46d   : > { %v2030_v20 = vpop.f32.mrf.mxu0  ;;  %v2077_v33 = vpop.f32.mrf.mxu1 }
 0x46e   : > { %v2031_v34 = vadd.f32 %v2030_v20, %v4796_v48  ;;  %v2078_v63 = vadd.f32 %v2077_v33, %v4796_v48 }
 0x474   : > { %v4790_v27 = vpop.f32.mrf.mxu2  ;;  %v4792_v39 = vpop.f32.mrf.mxu3 }
 0x475   : > { %v2033_v31 = vpop.f32.mrf.mxu0  ;;  %v2080_v59 = vpop.f32.mrf.mxu1 }
 0x476   : > { %v2034_v30 = vadd.f32 %v2033_v31, %v4794_v61  ;;  %v2081_v18 = vadd.f32 %v2080_v59, %v4794_v61 }
 0x47c   : > { %v4800_v41 = vpop.f32.mrf.mxu2  ;;  %v4802_v43 = vpop.f32.mrf.mxu3 }
 0x47d   : > { %v2036_v17 = vpop.f32.mrf.mxu0  ;;  %v2083_v26 = vpop.f32.mrf.mxu1 }
 0x47e   : > { %v2037_v38 = vadd.f32 %v2036_v17, %v4788_v57  ;;  %v2084_v35 = vadd.f32 %v2083_v26, %v4788_v57 }
 0x480   : > { %2983 = vtanh.f32 %v2037_v38 }
 0x481   : > { %2985 = vtanh.f32 %v2084_v35 }
 0x482   : > { %2987 = vtanh.f32 %v2034_v30  ;;  %v4850_v30 = vld [vmem:[%s4939_s11] sm:$0x7] }
 0x483   : > { %2989 = vtanh.f32 %v2081_v18 }
 0x484   : > { %v4818_v15 = vpop.f32.mrf.mxu2  ;;  %v4820_v45 = vpop.f32.mrf.mxu3  ;;  %2991 = vtanh.f32 %v2031_v34 }
 0x485   : > { %2993 = vtanh.f32 %v2078_v63 }
 0x486   : > { %v2984_v32 = vpop.eup %2983  ;;  %2995 = vtanh.f32 %v2028_v29 }
 0x487   : > { %v2986_v8 = vpop.eup %2985  ;;  %2997 = vtanh.f32 %v2075_v6  ;;  %2236 = vmatpush.msrb.mxu0 %v2984_v32 }
 0x488   : > { %v2988_v13 = vpop.eup %2987  ;;  %2999 = vtanh.f32 %v2025_v2  ;;  %2256 = vmatpush.msrb.mxu1 %v2986_v8 }
 0x489   : > { %v2990_v23 = vpop.eup %2989  ;;  %3001 = vtanh.f32 %v2072_v49  ;;  %2237 = vmatpush.msrb.mxu0 %v2988_v13  ;;  %v2169_v13 = vadd.f32 %v4820_v45, %v4798_v62 }
 0x48a   : > { %v2992_v50 = vpop.eup %2991  ;;  %3003 = vtanh.f32 %v2022_v55  ;;  %2257 = vmatpush.msrb.mxu1 %v2990_v23 }
 0x48b   : > { %v2994_v56 = vpop.eup %2993  ;;  %3005 = vtanh.f32 %v2069_v53  ;;  %2238 = vmatpush.msrb.mxu0 %v2992_v50  ;;  %v2122_v53 = vadd.f32 %v4818_v15, %v4798_v62  ;;  %v2163_v15 = vadd.f32 %v4792_v39, %v4810_v10  ;;  %v2104_v50 = vadd.f32 %v4772_v25, %v4839_v47 }
 0x48c   : > { %v2124_v24 = vpop.f32.mrf.mxu2  ;;  %v2171_v11 = vpop.f32.mrf.mxu3  ;;  %3007 = vtanh.f32 %v2019_v46  ;;  %2258 = vmatpush.msrb.mxu1 %v2994_v56  ;;  %v2119_v46 = vadd.f32 %v4800_v41, %v4807_v14  ;;  %v2113_v41 = vadd.f32 %v4784_v44, %v4814_v60 }
 0x48d   : > { %v2996_v37 = vpop.eup %2995  ;;  %3009 = vtanh.f32 %v2066_v52  ;;  %v2125_v55 = vadd.f32 %v2124_v24, %v4796_v48  ;;  %v2172_v8 = vadd.f32 %v2171_v11, %v4796_v48  ;;  %v2116_v48 = vadd.f32 %v4790_v27, %v4810_v10 }
 0x48e   : > { %v2998_v12 = vpop.eup %2997  ;;  %2239 = vmatpush.msrb.mxu0 %v2996_v37  ;;  %3011 = vtanh.f32 %v2016_v1  ;;  %v2157_v10 = vadd.f32 %v4782_v3, %v4827_v36  ;;  %v2107_v52 = vadd.f32 %v4776_v5, %v4831_v22  ;;  %v2225_v37 = vpop.permute.xlu2 %2224 }
 0x48f   : > { %v3000_v54 = vpop.eup %2999  ;;  %2259 = vmatpush.msrb.mxu1 %v2998_v12  ;;  %3013 = vtanh.f32 %v2063_v16 }
 0x490   : > { %v3002_v20 = vpop.eup %3001  ;;  %2240 = vmatpush.msrb.mxu0 %v3000_v54  ;;  %3015 = vtanh.f32 %v2013_v42 }
 0x491   : > { %v3004_v33 = vpop.eup %3003  ;;  %2260 = vmatpush.msrb.mxu1 %v3002_v20  ;;  %3017 = vtanh.f32 %v2060_v51 }
 0x492   : > { %v3006_v31 = vpop.eup %3005  ;;  %2241 = vmatpush.msrb.mxu0 %v3004_v33  ;;  %3019 = vtanh.f32 %v2010_v4 }
 0x493   : > { %v3008_v21 = vpop.eup %3007  ;;  %2261 = vmatpush.msrb.mxu1 %v3006_v31  ;;  %3021 = vtanh.f32 %v2057_v40 }
 0x494   : > { %v3010_v59 = vpop.eup %3009  ;;  %v2127_v7 = vpop.f32.mrf.mxu2  ;;  %2242 = vmatpush.msrb.mxu0 %v3008_v21 }
 0x495   : > { %v2174_v17 = vpop.f32.mrf.mxu3  ;;  %v3012_v26 = vpop.eup %3011  ;;  %2262 = vmatpush.msrb.mxu1 %v3010_v59  ;;  %v2128_v6 = vadd.f32 %v2127_v7, %v4794_v61 }
 0x496   : > { %v3014_v38 = vpop.eup %3013  ;;  %2243 = vmatpush.msrb.mxu0 %v3012_v26  ;;  %v2175_v32 = vadd.f32 %v2174_v17, %v4794_v61 }
 0x497   : > { %v3016_v58 = vpop.eup %3015  ;;  %2263 = vmatpush.msrb.mxu1 %v3014_v38 }
 0x498   : > { %v3018_v35 = vpop.eup %3017  ;;  %2244 = vmatpush.msrb.mxu0 %v3016_v58 }
 0x499   : > { %v3020_v18 = vpop.eup %3019  ;;  %2264 = vmatpush.msrb.mxu1 %v3018_v35 }
 0x49a   : > { %v3022_v34 = vpop.eup %3021  ;;  %2245 = vmatpush.msrb.mxu0 %v3020_v18 }
 0x49b   : > { %2265 = vmatpush.msrb.mxu1 %v3022_v34  ;;  %2610 = vmatmul.msk.f32.vlgmr.msrb.gmra.mxu0 %vm857_vm2, %v4850_v30 }
 0x49c   : > { %2611 = vmatmul.msk.f32.vlgmr.msrb.gmra.mxu1 %vm857_vm2, %v4850_v30  ;;  %v2130_v63 = vpop.f32.mrf.mxu2 }
 0x49d   : > { %v2177_v29 = vpop.f32.mrf.mxu3  ;;  %v2131_v2 = vadd.f32 %v2130_v63, %v4788_v57 }
 0x49e   : > { %v2178_v49 = vadd.f32 %v2177_v29, %v4788_v57  ;;  %v2166_v57 = vadd.f32 %v4802_v43, %v4807_v14  ;;  %v2160_v43 = vadd.f32 %v4786_v0, %v4814_v60  ;;  %v2110_v14 = vadd.f32 %v4780_v9, %v4827_v36 }
 0x49f   : > { %3023 = vtanh.f32 %v2131_v2  ;;  %v2154_v60 = vadd.f32 %v4778_v19, %v4831_v22  ;;  %v2151_v36 = vadd.f32 %v4774_v28, %v4839_v47 }
 0x4a0   : > { %3025 = vtanh.f32 %v2178_v49 }
 0x4a1   : > { %3027 = vtanh.f32 %v2128_v6 }
 0x4a2   : > { %3029 = vtanh.f32 %v2175_v32 }
 0x4a3   : > { %3031 = vtanh.f32 %v2125_v55 }
 0x4a4   : > { %3033 = vtanh.f32 %v2172_v8 }
 0x4a5   : > { %v3024_v61 = vpop.eup %3023  ;;  %3035 = vtanh.f32 %v2122_v53 }
 0x4a6   : > { %v3026_v23 = vpop.eup %3025  ;;  %3037 = vtanh.f32 %v2169_v13  ;;  %2276 = vmatpush.msrb.mxu2 %v3024_v61 }
 0x4a7   : > { %v3028_v62 = vpop.eup %3027  ;;  %3039 = vtanh.f32 %v2119_v46  ;;  %2296 = vmatpush.msrb.mxu3 %v3026_v23 }
 0x4a8   : > { %v3030_v45 = vpop.eup %3029  ;;  %3041 = vtanh.f32 %v2166_v57  ;;  %2277 = vmatpush.msrb.mxu2 %v3028_v62 }
 0x4a9   : > { %v3032_v27 = vpop.eup %3031  ;;  %3043 = vtanh.f32 %v2116_v48  ;;  %2297 = vmatpush.msrb.mxu3 %v3030_v45 }
 0x4aa   : > { %v3034_v39 = vpop.eup %3033  ;;  %3045 = vtanh.f32 %v2163_v15  ;;  %2278 = vmatpush.msrb.mxu2 %v3032_v27 }
 0x4ab   : > { %v3036_v44 = vpop.eup %3035  ;;  %3047 = vtanh.f32 %v2113_v41  ;;  %2298 = vmatpush.msrb.mxu3 %v3034_v39 }
 0x4ac   : > { %v3038_v0 = vpop.eup %3037  ;;  %3049 = vtanh.f32 %v2160_v43  ;;  %2279 = vmatpush.msrb.mxu2 %v3036_v44 }
 0x4ad   : > { %v3040_v9 = vpop.eup %3039  ;;  %3051 = vtanh.f32 %v2110_v14  ;;  %2299 = vmatpush.msrb.mxu3 %v3038_v0 }
 0x4ae   : > { %v3042_v3 = vpop.eup %3041  ;;  %3053 = vtanh.f32 %v2157_v10  ;;  %2280 = vmatpush.msrb.mxu2 %v3040_v9 }
 0x4af   : > { %v3044_v5 = vpop.eup %3043  ;;  %3055 = vtanh.f32 %v2107_v52  ;;  %2300 = vmatpush.msrb.mxu3 %v3042_v3 }
 0x4b0   : > { %v3046_v1 = vpop.eup %3045  ;;  %3057 = vtanh.f32 %v2154_v60  ;;  %2281 = vmatpush.msrb.mxu2 %v3044_v5 }
 0x4b1   : > { %v3048_v19 = vpop.eup %3047  ;;  %3059 = vtanh.f32 %v2104_v50  ;;  %2301 = vmatpush.msrb.mxu3 %v3046_v1 }
 0x4b2   : > { %v3050_v22 = vpop.eup %3049  ;;  %3061 = vtanh.f32 %v2151_v36  ;;  %2282 = vmatpush.msrb.mxu2 %v3048_v19 }
 0x4b3   : > { %v3052_v25 = vpop.eup %3051  ;;  %2302 = vmatpush.msrb.mxu3 %v3050_v22 }
 0x4b4   : > { %v3054_v56 = vpop.eup %3053  ;;  %2283 = vmatpush.msrb.mxu2 %v3052_v25 }
 0x4b5   : > { %v3056_v28 = vpop.eup %3055  ;;  %2303 = vmatpush.msrb.mxu3 %v3054_v56 }
 0x4b6   : > { %v3058_v16 = vpop.eup %3057  ;;  %2284 = vmatpush.msrb.mxu2 %v3056_v28 }
 0x4b7   : > { %v3060_v24 = vpop.eup %3059  ;;  %2304 = vmatpush.msrb.mxu3 %v3058_v16 }
 0x4b8   : > { %v3062_v11 = vpop.eup %3061  ;;  %2285 = vmatpush.msrb.mxu2 %v3060_v24 }
 0x4b9   : > { %2305 = vmatpush.msrb.mxu3 %v3062_v11  ;;  %2612 = vmatmul.msk.f32.vlgmr.msrb.gmra.mxu2 %vm857_vm2, %v4850_v30 }
 0x4ba   : > { %2613 = vmatmul.msk.f32.vlgmr.msrb.gmra.mxu3 %vm857_vm2, %v4850_v30 }
 0x518   : > { %v2247_v42 = vpop.f32.mrf.mxu0 }
 0x519   : > { %v2267_v12 = vpop.f32.mrf.mxu1  ;;  %v2248_v51 = vadd.f32 %v2247_v42, %v2225_v37 }
 0x51a   : > { %v2268_v47 = vadd.f32 %v2267_v12, %v2225_v37 }
 0x51c   : > { %v2314_v54 = vrot.slane %v2268_v47, 4 }
 0x51e   : > { %v2317_v4 = vsel %vm2316_vm3, %v2248_v51, %v2314_v54 }
 0x51f   : > { %2321 = vst [vmem:[%s434_s22] sm:$0x77] %v2317_v4 }
 0x53c   : > { %v2287_v20 = vpop.f32.mrf.mxu2 }
 0x53d   : > { %v2307_v40 = vpop.f32.mrf.mxu3  ;;  %v2288_v31 = vadd.f32 %v2287_v20, %v2225_v37 }
 0x53e   : > { %v2308_v33 = vadd.f32 %v2307_v40, %v2225_v37 }
 0x540   : > { %v2315_v21 = vrot.slane %v2308_v33, 4 }
 0x542   : > { %v2318_v59 = vsel %vm2316_vm3, %v2288_v31, %v2315_v21 }
 0x543   : > { %2322 = vst [vmem:[%s434_s22 + $0x8] sm:$0x77] %v2318_v59 }
 0x544   : > { %3090 = shalt.err (!%p3087_p3)
}
 0x545   : > { %2620 = dma.vmem_to_hbm [thread:$0]  (%p3236_p5), %s2338_s16, 256, %s2340_s27, %s2324_s14  }
 0x546 PF: > { %p2626_p4 = scmp.ge.s32.totalorder %s3125_s28, 2  ;;  %s2351_s20 = sand.u32 1, %s3113_s25  }
 0x547   : > { %s2352_s22 = scalar_lea.sflag [#allocation3], %s2351_s20 }
 0x548   : > { %p2623_p7 = pnand %p2626_p4, %p3240_p6 }
 0x54a   : > { %p2624_p8 = pneg %p2623_p7 }
 0x54c   : > { %3108 = dma.done.wait (%p2624_p8), %s2352_s22, 256  }
 0x54d   : > { %3110 = vsyncadd (%p2624_p8), %s2352_s22, 4294967040  ;;  %s5169_s28 = sld [smem:[#allocation6_spill]]  ;;  %s5172_s25 = smov %s3117_s26 }
 0x54e   : > { %s5170_s17 = sld [smem:[#allocation5_spill]] }
 0x54f   : > { %s5171_s27 = sld [smem:[#allocation7_spill]] }
 0x553   : > { %p23_p9 = scmp.ge.s32.totalorder %s5169_s28, 4  }
 0x554   : > { %s5173_s26 = smov %s5170_s17 }
 0x555   :  { %25 = sbr.rel (!%p23_p9) target bundleno = 3 (0x3), region = 107 }
 0x55a   :  { %2358 = vsyncpa [#allocation3], 1 }
 0x55b   :  { %2360 = vsyncpa [#allocation3 + $0x1], 1 }

</bundles_post_ra>
